<compile_context>
chip_gen: v6e
topology: v6e:2x2x1
jax: 0.10.0
libtpu: 0.0.40
codegen_flags: <defaults>
</compile_context>

<pallas_src>
import jax
import jax.numpy as jnp
from jax.experimental import pallas as pl
from jax.experimental.pallas import tpu as pltpu

# ----------------------------- configuration -------------------------------
IN_CHANNEL   = 32     # config['in_channel']  (even)
N_FLOW       = 2      # config['n_flow']
HIDDEN_DIM   = 64     # config['hidden_dim']
HIDDEN_DEPTH = 1      # config['hidden_depth']
N_FACTORS    = 2      # config['n_factors']
N_BLOCKS     = 2      # DoubleVectorCouplingBlock default
BATCH        = 8      # rows per flow pass
N_PASS       = 2      # FactorLoss consumes two flow passes (sample1, sample2)
RHO          = 0.975  # FactorLoss rho default

NEG_SLOPE = 0.01      # nn.LeakyReLU default
EPS       = 1e-6      # VectorActNorm epsilon
C2        = IN_CHANNEL // 2
H2        = 2 * HIDDEN_DIM               # fused (s|t) hidden width = 128 lanes
NBLK      = N_FLOW * N_BLOCKS            # total coupling blocks
CPF       = IN_CHANNEL // N_FACTORS      # channels per factor
M_ROWS    = N_PASS * BATCH               # stacked batch rows

# TODO(synk): retrieve()/config plumbing and the train_op() no-op closure of
# the original module are host-side Python with no kernel counterpart.


def _leaky_relu(x):
    # max(x, a*x) == leaky_relu(x): one VALU op instead of cmp+select.
    return jnp.maximum(x, NEG_SLOPE * x)


def _bf16_dot(a, b):
    # MXU-native bf16 operands, f32 accumulation; elementwise math stays f32.
    return jnp.dot(a.astype(jnp.bfloat16), b.astype(jnp.bfloat16),
                   preferred_element_type=jnp.float32)


# ================ fused FactorTransformer + FactorLoss kernel ===============
def fused_flow_loss_kernel(x_ref, maskw_ref, w1_ref, wm_ref, w3_ref, bias_ref,
                           perm_ref, out_ref, logdet_ref, loss_ref):
    x = x_ref[...]                       # (2B, C) f32: rows 0:B pass-1, B:2B pass-2
    x0 = x[:, :C2]
    x1 = x[:, C2:]
    logdet = jnp.zeros((M_ROWS, 1), jnp.float32)

    def actnorm_half(h):
        # Data-dependent ActNorm with statistics per 8-row sub-batch so the
        # stacked two-pass call matches two independent calls exactly.
        outs, lds = [], []
        for g in range(N_PASS):
            hg = h[g * BATCH:(g + 1) * BATCH]
            mean = jnp.mean(hg, axis=0, keepdims=True)
            var = jnp.sum((hg - mean) ** 2, axis=0, keepdims=True) * (1.0 / (BATCH - 1))
            std = jnp.sqrt(var)
            scale = pl.reciprocal(std + EPS, approx=True)        # EUP slot (data path)
            outs.append(scale * (hg - mean))
            # log|scale| == -log(std+eps): logdet stays on the exact path
            ld = -jnp.sum(jnp.log(std + EPS), axis=1, keepdims=True)   # (1,1)
            lds.append(jnp.broadcast_to(ld, (BATCH, 1)))
        # NOTE: at larger stacked batches these axis-0 reductions should become
        # ones-vector matmuls (MXU) to keep the XLU free.
        return jnp.concatenate(outs, axis=0), jnp.concatenate(lds, axis=0)

    for f in range(N_FLOW):
        # ---- VectorActNorm (per-channel, per sub-batch) ----
        x0, ld0 = actnorm_half(x0)
        x1, ld1 = actnorm_half(x1)
        logdet = logdet + ld0 + ld1

        # ---- DoubleVectorCouplingBlock, fused s|t MLPs (bf16 MXU, f32 VPU) ----
        for i in range(N_BLOCKS):
            if i % 2 != 0:
                x0, x1 = x1, x0                       # half swap: zero instructions
            blk = f * N_BLOCKS + i
            bb = bias_ref[blk]                        # (D+3, 2H) f32 packed biases
            h = _bf16_dot(x0, w1_ref[blk]) + bb[0:1, :]
            h = _leaky_relu(h)
            for d in range(HIDDEN_DEPTH):
                h = _bf16_dot(h, wm_ref[blk, d]) + bb[1 + d:2 + d, :]
                h = _leaky_relu(h)
            hb = h.astype(jnp.bfloat16)
            # Separate zero-padded s / t output matmuls (no lane-offset slice).
            s = jnp.tanh(jnp.dot(hb, w3_ref[blk, 0], preferred_element_type=jnp.float32)
                         + bb[HIDDEN_DEPTH + 1:HIDDEN_DEPTH + 2, :C2])
            t = (jnp.dot(hb, w3_ref[blk, 1], preferred_element_type=jnp.float32)
                 + bb[HIDDEN_DEPTH + 2:HIDDEN_DEPTH + 3, :C2])
            x1 = x1 * jnp.exp(s) + t
            logdet = logdet + jnp.sum(s, axis=1, keepdims=True)

        # ---- Shuffle for EVERY flow (incl. last): 4 exact f32 block matmuls ----
        nx0 = (jnp.dot(x0, perm_ref[f, 0, 0], preferred_element_type=jnp.float32)
               + jnp.dot(x1, perm_ref[f, 1, 0], preferred_element_type=jnp.float32))
        nx1 = (jnp.dot(x0, perm_ref[f, 0, 1], preferred_element_type=jnp.float32)
               + jnp.dot(x1, perm_ref[f, 1, 1], preferred_element_type=jnp.float32))
        x0, x1 = nx0, nx1

    # ---- flow outputs: one lane-contiguous (2B, C) sample buffer + logdet ----
    out_ref[...] = jnp.concatenate([x0, x1], axis=1)
    logdet_ref[...] = logdet

    # ---- FactorLoss, fused (a few vregs of VPU work on resident data) ----
    mw = maskw_ref[...]                               # (4, C2) f32
    rm0, rm1 = mw[0:1, :], mw[1:2, :]                 # rho * factor_mask per half
    wv0, wv1 = mw[2:3, :], mw[3:4, :]                 # 0.5 / (1 - mask*rho^2) per half
    s1_0, s1_1 = x0[:BATCH], x1[:BATCH]
    s2_0, s2_1 = x0[BATCH:], x1[BATCH:]
    ld1, ld2 = logdet[:BATCH], logdet[BATCH:]

    nll1 = 0.5 * (jnp.sum(s1_0 * s1_0, axis=1, keepdims=True)
                  + jnp.sum(s1_1 * s1_1, axis=1, keepdims=True))
    loss1 = jnp.mean(nll1 - ld1, axis=0, keepdims=True)          # (1,1)

    c0 = s2_0 - rm0 * s1_0
    c1 = s2_1 - rm1 * s1_1
    nll2 = (jnp.sum(c0 * c0 * wv0, axis=1, keepdims=True)
            + jnp.sum(c1 * c1 * wv1, axis=1, keepdims=True))
    loss2 = jnp.mean(nll2 - ld2, axis=0, keepdims=True)          # (1,1)

    loss_ref[...] = jnp.concatenate([loss1 + loss2, loss1, loss2], axis=1)


# ---------------- cost estimate (advisory, lets XLA overlap the call) -------
_MM_FLOPS = 2 * M_ROWS * ((C2 * H2 + HIDDEN_DEPTH * H2 * H2 + 2 * H2 * C2) * NBLK
                          + N_FLOW * 4 * C2 * C2)
_TRANSCEND = 2 * M_ROWS * C2 * NBLK + 4 * N_PASS * IN_CHANNEL * N_FLOW
_BYTES = (M_ROWS * IN_CHANNEL * 4 + 4 * C2 * 4                    # x, maskw
          + NBLK * C2 * H2 * 2                                    # w1f (bf16)
          + NBLK * HIDDEN_DEPTH * H2 * H2 * 2                     # wmf (bf16)
          + NBLK * 2 * H2 * C2 * 2                                # w3f (bf16)
          + NBLK * (HIDDEN_DEPTH + 3) * H2 * 4                    # packed biases
          + N_FLOW * 4 * C2 * C2 * 4                              # perms
          + M_ROWS * IN_CHANNEL * 4 + M_ROWS * 4 + 3 * 4)         # outputs
_COST = pl.CostEstimate(flops=_MM_FLOPS, transcendentals=_TRANSCEND,
                        bytes_accessed=_BYTES)
_VMEM = pl.BlockSpec(memory_space=pltpu.MemorySpace.VMEM)


# ------------------------------- wrapper ------------------------------------
def _factor_mask_weights(factors):
    """(4, C2) per-half constants: rows 0-1 = rho*mask, rows 2-3 = 0.5/(1-mask*rho^2).

    torch: (factors == i) | (factors < 0) & (factors != -i)   (& binds tighter).
    """
    i = jnp.arange(N_FACTORS)
    m = ((factors == i) | ((factors < 0) & (factors != -i))).astype(jnp.float32)
    maskc = jnp.repeat(m, CPF)                                    # (C,) channel mask
    rho_m = (RHO * maskc).reshape(2, C2)
    wv = (0.5 / (1.0 - maskc * (RHO * RHO))).reshape(2, C2)
    return jnp.concatenate([rho_m, wv], axis=0)


def factor_transformer_factor_loss(xa_nchw, xb_nchw, factors, kparams):
    """Two FactorTransformer passes + FactorLoss.forward in ONE pallas_call.

    Returns (loss, log) with FactorLoss.forward's semantics plus the flow
    samples / logdets of both passes for inspection.
    """
    xa = xa_nchw.reshape(BATCH, IN_CHANNEL)       # .squeeze()
    xb = xb_nchw.reshape(BATCH, IN_CHANNEL)
    x = jnp.concatenate([xa, xb], axis=0)         # (2B, C) stacked batch
    maskw = _factor_mask_weights(factors)

    out_x, logdet, losses = pl.pallas_call(
        fused_flow_loss_kernel,
        out_shape=(jax.ShapeDtypeStruct((M_ROWS, IN_CHANNEL), jnp.float32),
                   jax.ShapeDtypeStruct((M_ROWS, 1), jnp.float32),
                   jax.ShapeDtypeStruct((1, 3), jnp.float32)),
        in_specs=[_VMEM] * 7,
        out_specs=(_VMEM, _VMEM, _VMEM),
        cost_estimate=_COST,
        # No grid: whole-array VMEM residency (~0.5 MiB on any generation).
        # Add a leading "parallel" batch grid axis (v7x 2-TC sharding) only
        # once the stacked batch reaches O(256) rows.
    )(x, maskw, kparams["w1f"], kparams["wmf"], kparams["w3f"],
      kparams["bias"], kparams["perm"])

    loss, loss1, loss2 = losses[0, 0], losses[0, 1], losses[0, 2]
    log = {"images": {}, "scalars": {"loss": loss, "loss1": loss1, "loss2": loss2}}
    samples = (out_x[:BATCH], out_x[BATCH:])                 # flat (B, C) each
    logdets = (logdet[:BATCH, 0], logdet[BATCH:, 0])         # (B,) each
    return loss, log, samples, logdets


# --------------------------- parameter init ---------------------------------
def init_params(key):
    """Raw per-net weights (for the reference) + fused / packed kernel params."""
    def lin(k, fan_in, shape):
        bound = 1.0 / jnp.sqrt(jnp.float32(fan_in))
        return jax.random.uniform(k, shape, jnp.float32, -bound, bound)

    NL = NBLK * 2     # one s-net and one t-net per coupling block
    ks = jax.random.split(key, 6 + N_FLOW)
    raw = {
        "w1": lin(ks[0], C2, (NL, C2, HIDDEN_DIM)),
        "b1": lin(ks[1], C2, (NL, 1, HIDDEN_DIM)),
        "wm": lin(ks[2], HIDDEN_DIM, (NL, HIDDEN_DEPTH, HIDDEN_DIM, HIDDEN_DIM)),
        "bm": lin(ks[3], HIDDEN_DIM, (NL, HIDDEN_DEPTH, 1, HIDDEN_DIM)),
        "w3": lin(ks[4], HIDDEN_DIM, (NL, HIDDEN_DIM, C2)),
        "b3": lin(ks[5], HIDDEN_DIM, (NL, 1, C2)),
    }
    idxs = [jax.random.permutation(ks[6 + f], IN_CHANNEL) for f in range(N_FLOW)]

    def blockdiag(a, c):
        top = jnp.concatenate([a, jnp.zeros((a.shape[0], c.shape[1]), a.dtype)], axis=1)
        bot = jnp.concatenate([jnp.zeros((c.shape[0], a.shape[1]), a.dtype), c], axis=1)
        return jnp.concatenate([top, bot], axis=0)

    w1f, wmf, w3f, biasf = [], [], [], []
    for blk in range(NBLK):
        s, t = 2 * blk, 2 * blk + 1
        # layer 0: concat s|t along the output lanes -> (C2, 2H)
        w1f.append(jnp.concatenate([raw["w1"][s], raw["w1"][t]], axis=1))
        # middle layers: block-diagonal -> (D, 2H, 2H)
        wmf.append(jnp.stack([blockdiag(raw["wm"][s, d], raw["wm"][t, d])
                              for d in range(HIDDEN_DEPTH)], axis=0))
        # output layer split back into zero-padded s and t matmuls -> (2, 2H, C2)
        w3s = jnp.concatenate([raw["w3"][s],
                               jnp.zeros((HIDDEN_DIM, C2), jnp.float32)], axis=0)
        w3t = jnp.concatenate([jnp.zeros((HIDDEN_DIM, C2), jnp.float32),
                               raw["w3"][t]], axis=0)
        w3f.append(jnp.stack([w3s, w3t], axis=0))
        # packed biases: row0=b1, rows 1..D=bm, row D+1=b3_s, row D+2=b3_t
        rows = [jnp.concatenate([raw["b1"][s, 0], raw["b1"][t, 0]], axis=0)]
        for d in range(HIDDEN_DEPTH):
            rows.append(jnp.concatenate([raw["bm"][s, d, 0], raw["bm"][t, d, 0]], axis=0))
        pad = jnp.zeros((H2 - C2,), jnp.float32)
        rows.append(jnp.concatenate([raw["b3"][s, 0], pad], axis=0))
        rows.append(jnp.concatenate([raw["b3"][t, 0], pad], axis=0))
        biasf.append(jnp.stack(rows, axis=0))                       # (D+3, 2H)

    # Shuffle perms for ALL flows (last one included, fused in-kernel):
    # perm[f, in_half, out_half]; x @ P == x[:, idx]
    perms = []
    for f in range(N_FLOW):
        P = jax.nn.one_hot(idxs[f], IN_CHANNEL, dtype=jnp.float32).T
        perms.append(jnp.stack(
            [jnp.stack([P[:C2, :C2], P[:C2, C2:]], axis=0),
             jnp.stack([P[C2:, :C2], P[C2:, C2:]], axis=0)], axis=0))

    fused = {
        "w1f": jnp.stack(w1f).astype(jnp.bfloat16),
        "wmf": jnp.stack(wmf).astype(jnp.bfloat16),
        "w3f": jnp.stack(w3f).astype(jnp.bfloat16),
        "bias": jnp.stack(biasf),            # f32 (added post-matmul in f32)
        "perm": jnp.stack(perms),            # f32 (exact permutation)
    }
    return fused, raw, idxs


# ------------------------- plain-JAX references ------------------------------
def _ref_mlp(x0, idx, p, use_tanh):
    h = _bf16_dot(x0, p["w1"][idx]) + p["b1"][idx]
    h = _leaky_relu(h)
    for d in range(HIDDEN_DEPTH):
        h = _bf16_dot(h, p["wm"][idx, d]) + p["bm"][idx, d]
        h = _leaky_relu(h)
    out = _bf16_dot(h, p["w3"][idx]) + p["b3"][idx]
    return jnp.tanh(out) if use_tanh else out


def reference_transformer(x_nchw, raw, idxs):
    """Single-pass reference with un-fused s/t nets; mirrors the kernel's
    bf16-matmul / f32-elementwise precision policy."""
    x = x_nchw.reshape(BATCH, IN_CHANNEL)
    logdet = jnp.zeros((BATCH,), jnp.float32)
    for f in range(N_FLOW):
        mean = jnp.mean(x, axis=0, keepdims=True)
        std = jnp.sqrt(jnp.sum((x - mean) ** 2, axis=0, keepdims=True) / (BATCH - 1))
        scale = 1.0 / (std + EPS)
        x = scale * (x - mean)
        logdet = logdet + jnp.sum(jnp.log(jnp.abs(scale)))
        for i in range(N_BLOCKS):
            if i % 2 != 0:
                x = jnp.concatenate([x[:, C2:], x[:, :C2]], axis=1)
            x0, x1 = x[:, :C2], x[:, C2:]
            base = (f * N_BLOCKS + i) * 2
            s = _ref_mlp(x0, base + 0, raw, True)
            t = _ref_mlp(x0, base + 1, raw, False)
            x = jnp.concatenate([x0, x1 * jnp.exp(s) + t], axis=1)
            logdet = logdet + jnp.sum(s, axis=1)
        x = x[:, idxs[f]]
    return x, logdet                          # (B, C), (B,)


def reference_factor_loss(sample1, sample2, logdet1, logdet2, factors, rho=RHO):
    """FactorLoss.forward on flat (B, C) samples and (B,) logdets."""
    nll1 = 0.5 * jnp.sum(sample1 ** 2, axis=1)
    loss1 = jnp.mean(nll1) - jnp.mean(logdet1)
    nll2 = 0.0
    for i in range(N_FACTORS):
        m = ((factors == i) | ((factors < 0) & (factors != -i))).astype(jnp.float32)
        s1_i = sample1[:, i * CPF:(i + 1) * CPF]
        s2_i = sample2[:, i * CPF:(i + 1) * CPF]
        cond = s2_i - m * rho * s1_i
        nl = 0.5 * jnp.sum(cond ** 2, axis=1)
        nll2 = nll2 + jnp.mean(nl / (1.0 - m * rho ** 2))
    loss2 = nll2 - jnp.mean(logdet2)
    return loss1 + loss2, loss1, loss2


# --------------------------------- main --------------------------------------
if __name__ == "__main__":
    key = jax.random.PRNGKey(0)
    k_param, k_x1, k_x2 = jax.random.split(key, 3)
    kparams, raw, idxs = init_params(k_param)

    # Two PyTorch-style NCHW inputs (B, C, 1, 1): FactorLoss consumes the
    # samples/logdets of a pair of FactorTransformer passes plus a factor index.
    xa = jax.random.normal(k_x1, (BATCH, IN_CHANNEL, 1, 1), jnp.float32)
    xb = jax.random.normal(k_x2, (BATCH, IN_CHANNEL, 1, 1), jnp.float32)
    shared_factor = jnp.array(0, jnp.int32)      # 'factors' argument

    fwd = jax.jit(factor_transformer_factor_loss)
    loss, log, samples, logdets = fwd(xa, xb, shared_factor, kparams)
    jax.block_until_ready((loss, log, samples, logdets))

    # --- correctness: flow part vs the two-call plain-JAX reference ---
    ref_s1, ref_ld1 = reference_transformer(xa, raw, idxs)
    ref_s2, ref_ld2 = reference_transformer(xb, raw, idxs)
    assert samples[0].shape == (BATCH, IN_CHANNEL)
    assert samples[1].shape == (BATCH, IN_CHANNEL)
    assert logdets[0].shape == (BATCH,) and logdets[1].shape == (BATCH,)
    assert jnp.allclose(samples[0], ref_s1, rtol=1e-2, atol=2e-2)
    assert jnp.allclose(samples[1], ref_s2, rtol=1e-2, atol=2e-2)
    assert jnp.allclose(logdets[0], ref_ld1, rtol=1e-2, atol=2e-2)
    assert jnp.allclose(logdets[1], ref_ld2, rtol=1e-2, atol=2e-2)

    # --- correctness: fused FactorLoss vs plain-JAX reference ---
    ref_loss, ref_l1, ref_l2 = reference_factor_loss(
        ref_s1, ref_s2, ref_ld1, ref_ld2, shared_factor)
    assert jnp.allclose(loss, ref_loss, rtol=1e-2, atol=2e-2)
    assert jnp.allclose(log["scalars"]["loss1"], ref_l1, rtol=1e-2, atol=2e-2)
    assert jnp.allclose(log["scalars"]["loss2"], ref_l2, rtol=1e-2, atol=2e-2)

    print("KERNEL_OK")
</pallas_src>

<mosaic_0001>
module attributes {stable_mosaic.version = 11 : i64} {
  func.func @fused_flow_loss_kernel(%arg0: memref<16x32xf32, #tpu.memory_space<vmem>>, %arg1: memref<4x16xf32, #tpu.memory_space<vmem>>, %arg2: memref<4x16x128xbf16, #tpu.memory_space<vmem>>, %arg3: memref<4x1x128x128xbf16, #tpu.memory_space<vmem>>, %arg4: memref<4x2x128x16xbf16, #tpu.memory_space<vmem>>, %arg5: memref<4x4x128xf32, #tpu.memory_space<vmem>>, %arg6: memref<2x2x2x16x16xf32, #tpu.memory_space<vmem>>, %arg7: memref<16x32xf32, #tpu.memory_space<vmem>>, %arg8: memref<16x1xf32, #tpu.memory_space<vmem>>, %arg9: memref<1x3xf32, #tpu.memory_space<vmem>>) attributes {dimension_semantics = [], scalar_prefetch = 0 : i64, scratch_operands = 0 : i64, tpu.core_type = #tpu.core_type<tc>} {
    %c0 = arith.constant 0 : index
    %c0_0 = arith.constant 0 : index
    %0 = vector.load %arg0[%c0, %c0_0] : memref<16x32xf32, #tpu.memory_space<vmem>>, vector<16x32xf32>
    %1 = vector.extract_strided_slice %0 {offsets = [0, 0], sizes = [16, 16], strides = [1, 1]} : vector<16x32xf32> to vector<16x16xf32>
    %2 = vector.extract_strided_slice %0 {offsets = [0, 16], sizes = [16, 16], strides = [1, 1]} : vector<16x32xf32> to vector<16x16xf32>
    %cst = arith.constant 0.000000e+00 : f32
    %3 = vector.broadcast %cst : f32 to vector<16x1xf32>
    %4 = vector.extract_strided_slice %1 {offsets = [0, 0], sizes = [8, 16], strides = [1, 1]} : vector<16x16xf32> to vector<8x16xf32>
    %cst_1 = arith.constant dense<0.000000e+00> : vector<16xf32>
    %5 = vector.multi_reduction <add>, %4, %cst_1 [0] : vector<8x16xf32> to vector<16xf32>
    %6 = vector.shape_cast %5 : vector<16xf32> to vector<1x16xf32>
    %cst_2 = arith.constant 8.000000e+00 : f32
    %7 = vector.broadcast %cst_2 : f32 to vector<1x16xf32>
    %8 = arith.divf %6, %7 : vector<1x16xf32>
    %9 = vector.broadcast %8 : vector<1x16xf32> to vector<8x16xf32>
    %10 = arith.subf %4, %9 : vector<8x16xf32>
    %11 = arith.mulf %10, %10 : vector<8x16xf32>
    %cst_3 = arith.constant dense<0.000000e+00> : vector<16xf32>
    %12 = vector.multi_reduction <add>, %11, %cst_3 [0] : vector<8x16xf32> to vector<16xf32>
    %13 = vector.shape_cast %12 : vector<16xf32> to vector<1x16xf32>
    %cst_4 = arith.constant 0.142857149 : f32
    %14 = vector.broadcast %cst_4 : f32 to vector<1x16xf32>
    %15 = arith.mulf %13, %14 : vector<1x16xf32>
    %16 = math.sqrt %15 : vector<1x16xf32>
    %cst_5 = arith.constant 9.99999997E-7 : f32
    %17 = vector.broadcast %cst_5 : f32 to vector<1x16xf32>
    %18 = arith.addf %16, %17 : vector<1x16xf32>
    %19 = tpu.reciprocal %18 {approx = true} : vector<1x16xf32> -> vector<1x16xf32>
    %20 = vector.broadcast %8 : vector<1x16xf32> to vector<8x16xf32>
    %21 = arith.subf %4, %20 : vector<8x16xf32>
    %22 = vector.broadcast %19 : vector<1x16xf32> to vector<8x16xf32>
    %23 = arith.mulf %22, %21 : vector<8x16xf32>
    %cst_6 = arith.constant 9.99999997E-7 : f32
    %24 = vector.broadcast %cst_6 : f32 to vector<1x16xf32>
    %25 = arith.addf %16, %24 : vector<1x16xf32>
    %26 = math.log %25 : vector<1x16xf32>
    %cst_7 = arith.constant dense<0.000000e+00> : vector<1xf32>
    %27 = vector.multi_reduction <add>, %26, %cst_7 [1] : vector<1x16xf32> to vector<1xf32>
    %28 = vector.shape_cast %27 : vector<1xf32> to vector<1x1xf32>
    %cst_8 = arith.constant 0.000000e+00 : f32
    %29 = vector.broadcast %cst_8 : f32 to vector<1x1xf32>
    %30 = arith.subf %29, %28 : vector<1x1xf32>
    %31 = vector.shape_cast %30 : vector<1x1xf32> to vector<1x1xf32>
    %32 = vector.broadcast %31 : vector<1x1xf32> to vector<8x1xf32>
    %33 = vector.extract_strided_slice %1 {offsets = [8, 0], sizes = [8, 16], strides = [1, 1]} : vector<16x16xf32> to vector<8x16xf32>
    %cst_9 = arith.constant dense<0.000000e+00> : vector<16xf32>
    %34 = vector.multi_reduction <add>, %33, %cst_9 [0] : vector<8x16xf32> to vector<16xf32>
    %35 = vector.shape_cast %34 : vector<16xf32> to vector<1x16xf32>
    %cst_10 = arith.constant 8.000000e+00 : f32
    %36 = vector.broadcast %cst_10 : f32 to vector<1x16xf32>
    %37 = arith.divf %35, %36 : vector<1x16xf32>
    %38 = vector.broadcast %37 : vector<1x16xf32> to vector<8x16xf32>
    %39 = arith.subf %33, %38 : vector<8x16xf32>
    %40 = arith.mulf %39, %39 : vector<8x16xf32>
    %cst_11 = arith.constant dense<0.000000e+00> : vector<16xf32>
    %41 = vector.multi_reduction <add>, %40, %cst_11 [0] : vector<8x16xf32> to vector<16xf32>
    %42 = vector.shape_cast %41 : vector<16xf32> to vector<1x16xf32>
    %cst_12 = arith.constant 0.142857149 : f32
    %43 = vector.broadcast %cst_12 : f32 to vector<1x16xf32>
    %44 = arith.mulf %42, %43 : vector<1x16xf32>
    %45 = math.sqrt %44 : vector<1x16xf32>
    %cst_13 = arith.constant 9.99999997E-7 : f32
    %46 = vector.broadcast %cst_13 : f32 to vector<1x16xf32>
    %47 = arith.addf %45, %46 : vector<1x16xf32>
    %48 = tpu.reciprocal %47 {approx = true} : vector<1x16xf32> -> vector<1x16xf32>
    %49 = vector.broadcast %37 : vector<1x16xf32> to vector<8x16xf32>
    %50 = arith.subf %33, %49 : vector<8x16xf32>
    %51 = vector.broadcast %48 : vector<1x16xf32> to vector<8x16xf32>
    %52 = arith.mulf %51, %50 : vector<8x16xf32>
    %cst_14 = arith.constant 9.99999997E-7 : f32
    %53 = vector.broadcast %cst_14 : f32 to vector<1x16xf32>
    %54 = arith.addf %45, %53 : vector<1x16xf32>
    %55 = math.log %54 : vector<1x16xf32>
    %cst_15 = arith.constant dense<0.000000e+00> : vector<1xf32>
    %56 = vector.multi_reduction <add>, %55, %cst_15 [1] : vector<1x16xf32> to vector<1xf32>
    %57 = vector.shape_cast %56 : vector<1xf32> to vector<1x1xf32>
    %cst_16 = arith.constant 0.000000e+00 : f32
    %58 = vector.broadcast %cst_16 : f32 to vector<1x1xf32>
    %59 = arith.subf %58, %57 : vector<1x1xf32>
    %60 = vector.shape_cast %59 : vector<1x1xf32> to vector<1x1xf32>
    %61 = vector.broadcast %60 : vector<1x1xf32> to vector<8x1xf32>
    %62 = tpu.concatenate %23, %52 in 0 : vector<8x16xf32>, vector<8x16xf32> -> vector<16x16xf32>
    %63 = tpu.concatenate %32, %61 in 0 : vector<8x1xf32>, vector<8x1xf32> -> vector<16x1xf32>
    %64 = vector.extract_strided_slice %2 {offsets = [0, 0], sizes = [8, 16], strides = [1, 1]} : vector<16x16xf32> to vector<8x16xf32>
    %cst_17 = arith.constant dense<0.000000e+00> : vector<16xf32>
    %65 = vector.multi_reduction <add>, %64, %cst_17 [0] : vector<8x16xf32> to vector<16xf32>
    %66 = vector.shape_cast %65 : vector<16xf32> to vector<1x16xf32>
    %cst_18 = arith.constant 8.000000e+00 : f32
    %67 = vector.broadcast %cst_18 : f32 to vector<1x16xf32>
    %68 = arith.divf %66, %67 : vector<1x16xf32>
    %69 = vector.broadcast %68 : vector<1x16xf32> to vector<8x16xf32>
    %70 = arith.subf %64, %69 : vector<8x16xf32>
    %71 = arith.mulf %70, %70 : vector<8x16xf32>
    %cst_19 = arith.constant dense<0.000000e+00> : vector<16xf32>
    %72 = vector.multi_reduction <add>, %71, %cst_19 [0] : vector<8x16xf32> to vector<16xf32>
    %73 = vector.shape_cast %72 : vector<16xf32> to vector<1x16xf32>
    %cst_20 = arith.constant 0.142857149 : f32
    %74 = vector.broadcast %cst_20 : f32 to vector<1x16xf32>
    %75 = arith.mulf %73, %74 : vector<1x16xf32>
    %76 = math.sqrt %75 : vector<1x16xf32>
    %cst_21 = arith.constant 9.99999997E-7 : f32
    %77 = vector.broadcast %cst_21 : f32 to vector<1x16xf32>
    %78 = arith.addf %76, %77 : vector<1x16xf32>
    %79 = tpu.reciprocal %78 {approx = true} : vector<1x16xf32> -> vector<1x16xf32>
    %80 = vector.broadcast %68 : vector<1x16xf32> to vector<8x16xf32>
    %81 = arith.subf %64, %80 : vector<8x16xf32>
    %82 = vector.broadcast %79 : vector<1x16xf32> to vector<8x16xf32>
    %83 = arith.mulf %82, %81 : vector<8x16xf32>
    %cst_22 = arith.constant 9.99999997E-7 : f32
    %84 = vector.broadcast %cst_22 : f32 to vector<1x16xf32>
    %85 = arith.addf %76, %84 : vector<1x16xf32>
    %86 = math.log %85 : vector<1x16xf32>
    %cst_23 = arith.constant dense<0.000000e+00> : vector<1xf32>
    %87 = vector.multi_reduction <add>, %86, %cst_23 [1] : vector<1x16xf32> to vector<1xf32>
    %88 = vector.shape_cast %87 : vector<1xf32> to vector<1x1xf32>
    %cst_24 = arith.constant 0.000000e+00 : f32
    %89 = vector.broadcast %cst_24 : f32 to vector<1x1xf32>
    %90 = arith.subf %89, %88 : vector<1x1xf32>
    %91 = vector.shape_cast %90 : vector<1x1xf32> to vector<1x1xf32>
    %92 = vector.broadcast %91 : vector<1x1xf32> to vector<8x1xf32>
    %93 = vector.extract_strided_slice %2 {offsets = [8, 0], sizes = [8, 16], strides = [1, 1]} : vector<16x16xf32> to vector<8x16xf32>
    %cst_25 = arith.constant dense<0.000000e+00> : vector<16xf32>
    %94 = vector.multi_reduction <add>, %93, %cst_25 [0] : vector<8x16xf32> to vector<16xf32>
    %95 = vector.shape_cast %94 : vector<16xf32> to vector<1x16xf32>
    %cst_26 = arith.constant 8.000000e+00 : f32
    %96 = vector.broadcast %cst_26 : f32 to vector<1x16xf32>
    %97 = arith.divf %95, %96 : vector<1x16xf32>
    %98 = vector.broadcast %97 : vector<1x16xf32> to vector<8x16xf32>
    %99 = arith.subf %93, %98 : vector<8x16xf32>
    %100 = arith.mulf %99, %99 : vector<8x16xf32>
    %cst_27 = arith.constant dense<0.000000e+00> : vector<16xf32>
    %101 = vector.multi_reduction <add>, %100, %cst_27 [0] : vector<8x16xf32> to vector<16xf32>
    %102 = vector.shape_cast %101 : vector<16xf32> to vector<1x16xf32>
    %cst_28 = arith.constant 0.142857149 : f32
    %103 = vector.broadcast %cst_28 : f32 to vector<1x16xf32>
    %104 = arith.mulf %102, %103 : vector<1x16xf32>
    %105 = math.sqrt %104 : vector<1x16xf32>
    %cst_29 = arith.constant 9.99999997E-7 : f32
    %106 = vector.broadcast %cst_29 : f32 to vector<1x16xf32>
    %107 = arith.addf %105, %106 : vector<1x16xf32>
    %108 = tpu.reciprocal %107 {approx = true} : vector<1x16xf32> -> vector<1x16xf32>
    %109 = vector.broadcast %97 : vector<1x16xf32> to vector<8x16xf32>
    %110 = arith.subf %93, %109 : vector<8x16xf32>
    %111 = vector.broadcast %108 : vector<1x16xf32> to vector<8x16xf32>
    %112 = arith.mulf %111, %110 : vector<8x16xf32>
    %cst_30 = arith.constant 9.99999997E-7 : f32
    %113 = vector.broadcast %cst_30 : f32 to vector<1x16xf32>
    %114 = arith.addf %105, %113 : vector<1x16xf32>
    %115 = math.log %114 : vector<1x16xf32>
    %cst_31 = arith.constant dense<0.000000e+00> : vector<1xf32>
    %116 = vector.multi_reduction <add>, %115, %cst_31 [1] : vector<1x16xf32> to vector<1xf32>
    %117 = vector.shape_cast %116 : vector<1xf32> to vector<1x1xf32>
    %cst_32 = arith.constant 0.000000e+00 : f32
    %118 = vector.broadcast %cst_32 : f32 to vector<1x1xf32>
    %119 = arith.subf %118, %117 : vector<1x1xf32>
    %120 = vector.shape_cast %119 : vector<1x1xf32> to vector<1x1xf32>
    %121 = vector.broadcast %120 : vector<1x1xf32> to vector<8x1xf32>
    %122 = tpu.concatenate %83, %112 in 0 : vector<8x16xf32>, vector<8x16xf32> -> vector<16x16xf32>
    %123 = tpu.concatenate %92, %121 in 0 : vector<8x1xf32>, vector<8x1xf32> -> vector<16x1xf32>
    %124 = arith.addf %3, %63 : vector<16x1xf32>
    %125 = arith.addf %124, %123 : vector<16x1xf32>
    %c0_33 = arith.constant 0 : index
    %c0_34 = arith.constant 0 : index
    %c0_35 = arith.constant 0 : index
    %126 = vector.load %arg5[%c0_33, %c0_34, %c0_35] : memref<4x4x128xf32, #tpu.memory_space<vmem>>, vector<1x4x128xf32>
    %127 = vector.shape_cast %126 : vector<1x4x128xf32> to vector<4x128xf32>
    %c0_36 = arith.constant 0 : index
    %c0_37 = arith.constant 0 : index
    %c0_38 = arith.constant 0 : index
    %128 = vector.load %arg2[%c0_36, %c0_37, %c0_38] : memref<4x16x128xbf16, #tpu.memory_space<vmem>>, vector<1x16x128xbf16>
    %129 = vector.shape_cast %128 : vector<1x16x128xbf16> to vector<16x128xbf16>
    %130 = arith.truncf %62 : vector<16x16xf32> to vector<16x16xbf16>
    %cst_39 = arith.constant dense<0.000000e+00> : vector<16x128xf32>
    %131 = tpu.matmul %130, %129, %cst_39 {dimension_numbers = #tpu.dot_dimension_numbers<[1], [0], [0], [1], [0, 0, 1, 1], [], []>} : vector<16x16xbf16>, vector<16x128xbf16>, vector<16x128xf32> -> vector<16x128xf32>
    %132 = vector.extract_strided_slice %127 {offsets = [0, 0], sizes = [1, 128], strides = [1, 1]} : vector<4x128xf32> to vector<1x128xf32>
    %133 = vector.broadcast %132 : vector<1x128xf32> to vector<16x128xf32>
    %134 = arith.addf %131, %133 : vector<16x128xf32>
    %cst_40 = arith.constant 0.00999999977 : f32
    %135 = vector.broadcast %cst_40 : f32 to vector<16x128xf32>
    %136 = arith.mulf %135, %134 : vector<16x128xf32>
    %137 = arith.maximumf %134, %136 : vector<16x128xf32>
    %c0_41 = arith.constant 0 : index
    %c0_42 = arith.constant 0 : index
    %c0_43 = arith.constant 0 : index
    %c0_44 = arith.constant 0 : index
    %138 = vector.load %arg3[%c0_41, %c0_42, %c0_43, %c0_44] : memref<4x1x128x128xbf16, #tpu.memory_space<vmem>>, vector<1x1x128x128xbf16>
    %139 = vector.shape_cast %138 : vector<1x1x128x128xbf16> to vector<128x128xbf16>
    %140 = arith.truncf %137 : vector<16x128xf32> to vector<16x128xbf16>
    %cst_45 = arith.constant dense<0.000000e+00> : vector<16x128xf32>
    %141 = tpu.matmul %140, %139, %cst_45 {dimension_numbers = #tpu.dot_dimension_numbers<[1], [0], [0], [1], [0, 0, 1, 1], [], []>} : vector<16x128xbf16>, vector<128x128xbf16>, vector<16x128xf32> -> vector<16x128xf32>
    %142 = vector.extract_strided_slice %127 {offsets = [1, 0], sizes = [1, 128], strides = [1, 1]} : vector<4x128xf32> to vector<1x128xf32>
    %143 = vector.broadcast %142 : vector<1x128xf32> to vector<16x128xf32>
    %144 = arith.addf %141, %143 : vector<16x128xf32>
    %cst_46 = arith.constant 0.00999999977 : f32
    %145 = vector.broadcast %cst_46 : f32 to vector<16x128xf32>
    %146 = arith.mulf %145, %144 : vector<16x128xf32>
    %147 = arith.maximumf %144, %146 : vector<16x128xf32>
    %148 = arith.truncf %147 : vector<16x128xf32> to vector<16x128xbf16>
    %c0_47 = arith.constant 0 : index
    %c0_48 = arith.constant 0 : index
    %c0_49 = arith.constant 0 : index
    %c0_50 = arith.constant 0 : index
    %149 = vector.load %arg4[%c0_47, %c0_48, %c0_49, %c0_50] : memref<4x2x128x16xbf16, #tpu.memory_space<vmem>>, vector<1x1x128x16xbf16>
    %150 = vector.shape_cast %149 : vector<1x1x128x16xbf16> to vector<128x16xbf16>
    %cst_51 = arith.constant dense<0.000000e+00> : vector<16x16xf32>
    %151 = tpu.matmul %148, %150, %cst_51 {dimension_numbers = #tpu.dot_dimension_numbers<[1], [0], [0], [1], [0, 0, 1, 1], [], []>} : vector<16x128xbf16>, vector<128x16xbf16>, vector<16x16xf32> -> vector<16x16xf32>
    %152 = vector.extract_strided_slice %127 {offsets = [2, 0], sizes = [1, 16], strides = [1, 1]} : vector<4x128xf32> to vector<1x16xf32>
    %153 = vector.broadcast %152 : vector<1x16xf32> to vector<16x16xf32>
    %154 = arith.addf %151, %153 : vector<16x16xf32>
    %155 = math.tanh %154 : vector<16x16xf32>
    %c0_52 = arith.constant 0 : index
    %c1 = arith.constant 1 : index
    %c0_53 = arith.constant 0 : index
    %c0_54 = arith.constant 0 : index
    %156 = vector.load %arg4[%c0_52, %c1, %c0_53, %c0_54] : memref<4x2x128x16xbf16, #tpu.memory_space<vmem>>, vector<1x1x128x16xbf16>
    %157 = vector.shape_cast %156 : vector<1x1x128x16xbf16> to vector<128x16xbf16>
    %cst_55 = arith.constant dense<0.000000e+00> : vector<16x16xf32>
    %158 = tpu.matmul %148, %157, %cst_55 {dimension_numbers = #tpu.dot_dimension_numbers<[1], [0], [0], [1], [0, 0, 1, 1], [], []>} : vector<16x128xbf16>, vector<128x16xbf16>, vector<16x16xf32> -> vector<16x16xf32>
    %159 = vector.extract_strided_slice %127 {offsets = [3, 0], sizes = [1, 16], strides = [1, 1]} : vector<4x128xf32> to vector<1x16xf32>
    %160 = vector.broadcast %159 : vector<1x16xf32> to vector<16x16xf32>
    %161 = arith.addf %158, %160 : vector<16x16xf32>
    %162 = math.exp %155 : vector<16x16xf32>
    %163 = arith.mulf %122, %162 : vector<16x16xf32>
    %164 = arith.addf %163, %161 : vector<16x16xf32>
    %cst_56 = arith.constant dense<0.000000e+00> : vector<16xf32>
    %165 = vector.multi_reduction <add>, %155, %cst_56 [1] : vector<16x16xf32> to vector<16xf32>
    %166 = vector.shape_cast %165 : vector<16xf32> to vector<16x1xf32>
    %167 = arith.addf %125, %166 : vector<16x1xf32>
    %c1_57 = arith.constant 1 : index
    %c0_58 = arith.constant 0 : index
    %c0_59 = arith.constant 0 : index
    %168 = vector.load %arg5[%c1_57, %c0_58, %c0_59] : memref<4x4x128xf32, #tpu.memory_space<vmem>>, vector<1x4x128xf32>
    %169 = vector.shape_cast %168 : vector<1x4x128xf32> to vector<4x128xf32>
    %c1_60 = arith.constant 1 : index
    %c0_61 = arith.constant 0 : index
    %c0_62 = arith.constant 0 : index
    %170 = vector.load %arg2[%c1_60, %c0_61, %c0_62] : memref<4x16x128xbf16, #tpu.memory_space<vmem>>, vector<1x16x128xbf16>
    %171 = vector.shape_cast %170 : vector<1x16x128xbf16> to vector<16x128xbf16>
    %172 = arith.truncf %164 : vector<16x16xf32> to vector<16x16xbf16>
    %cst_63 = arith.constant dense<0.000000e+00> : vector<16x128xf32>
    %173 = tpu.matmul %172, %171, %cst_63 {dimension_numbers = #tpu.dot_dimension_numbers<[1], [0], [0], [1], [0, 0, 1, 1], [], []>} : vector<16x16xbf16>, vector<16x128xbf16>, vector<16x128xf32> -> vector<16x128xf32>
    %174 = vector.extract_strided_slice %169 {offsets = [0, 0], sizes = [1, 128], strides = [1, 1]} : vector<4x128xf32> to vector<1x128xf32>
    %175 = vector.broadcast %174 : vector<1x128xf32> to vector<16x128xf32>
    %176 = arith.addf %173, %175 : vector<16x128xf32>
    %cst_64 = arith.constant 0.00999999977 : f32
    %177 = vector.broadcast %cst_64 : f32 to vector<16x128xf32>
    %178 = arith.mulf %177, %176 : vector<16x128xf32>
    %179 = arith.maximumf %176, %178 : vector<16x128xf32>
    %c1_65 = arith.constant 1 : index
    %c0_66 = arith.constant 0 : index
    %c0_67 = arith.constant 0 : index
    %c0_68 = arith.constant 0 : index
    %180 = vector.load %arg3[%c1_65, %c0_66, %c0_67, %c0_68] : memref<4x1x128x128xbf16, #tpu.memory_space<vmem>>, vector<1x1x128x128xbf16>
    %181 = vector.shape_cast %180 : vector<1x1x128x128xbf16> to vector<128x128xbf16>
    %182 = arith.truncf %179 : vector<16x128xf32> to vector<16x128xbf16>
    %cst_69 = arith.constant dense<0.000000e+00> : vector<16x128xf32>
    %183 = tpu.matmul %182, %181, %cst_69 {dimension_numbers = #tpu.dot_dimension_numbers<[1], [0], [0], [1], [0, 0, 1, 1], [], []>} : vector<16x128xbf16>, vector<128x128xbf16>, vector<16x128xf32> -> vector<16x128xf32>
    %184 = vector.extract_strided_slice %169 {offsets = [1, 0], sizes = [1, 128], strides = [1, 1]} : vector<4x128xf32> to vector<1x128xf32>
    %185 = vector.broadcast %184 : vector<1x128xf32> to vector<16x128xf32>
    %186 = arith.addf %183, %185 : vector<16x128xf32>
    %cst_70 = arith.constant 0.00999999977 : f32
    %187 = vector.broadcast %cst_70 : f32 to vector<16x128xf32>
    %188 = arith.mulf %187, %186 : vector<16x128xf32>
    %189 = arith.maximumf %186, %188 : vector<16x128xf32>
    %190 = arith.truncf %189 : vector<16x128xf32> to vector<16x128xbf16>
    %c1_71 = arith.constant 1 : index
    %c0_72 = arith.constant 0 : index
    %c0_73 = arith.constant 0 : index
    %c0_74 = arith.constant 0 : index
    %191 = vector.load %arg4[%c1_71, %c0_72, %c0_73, %c0_74] : memref<4x2x128x16xbf16, #tpu.memory_space<vmem>>, vector<1x1x128x16xbf16>
    %192 = vector.shape_cast %191 : vector<1x1x128x16xbf16> to vector<128x16xbf16>
    %cst_75 = arith.constant dense<0.000000e+00> : vector<16x16xf32>
    %193 = tpu.matmul %190, %192, %cst_75 {dimension_numbers = #tpu.dot_dimension_numbers<[1], [0], [0], [1], [0, 0, 1, 1], [], []>} : vector<16x128xbf16>, vector<128x16xbf16>, vector<16x16xf32> -> vector<16x16xf32>
    %194 = vector.extract_strided_slice %169 {offsets = [2, 0], sizes = [1, 16], strides = [1, 1]} : vector<4x128xf32> to vector<1x16xf32>
    %195 = vector.broadcast %194 : vector<1x16xf32> to vector<16x16xf32>
    %196 = arith.addf %193, %195 : vector<16x16xf32>
    %197 = math.tanh %196 : vector<16x16xf32>
    %c1_76 = arith.constant 1 : index
    %c1_77 = arith.constant 1 : index
    %c0_78 = arith.constant 0 : index
    %c0_79 = arith.constant 0 : index
    %198 = vector.load %arg4[%c1_76, %c1_77, %c0_78, %c0_79] : memref<4x2x128x16xbf16, #tpu.memory_space<vmem>>, vector<1x1x128x16xbf16>
    %199 = vector.shape_cast %198 : vector<1x1x128x16xbf16> to vector<128x16xbf16>
    %cst_80 = arith.constant dense<0.000000e+00> : vector<16x16xf32>
    %200 = tpu.matmul %190, %199, %cst_80 {dimension_numbers = #tpu.dot_dimension_numbers<[1], [0], [0], [1], [0, 0, 1, 1], [], []>} : vector<16x128xbf16>, vector<128x16xbf16>, vector<16x16xf32> -> vector<16x16xf32>
    %201 = vector.extract_strided_slice %169 {offsets = [3, 0], sizes = [1, 16], strides = [1, 1]} : vector<4x128xf32> to vector<1x16xf32>
    %202 = vector.broadcast %201 : vector<1x16xf32> to vector<16x16xf32>
    %203 = arith.addf %200, %202 : vector<16x16xf32>
    %204 = math.exp %197 : vector<16x16xf32>
    %205 = arith.mulf %62, %204 : vector<16x16xf32>
    %206 = arith.addf %205, %203 : vector<16x16xf32>
    %cst_81 = arith.constant dense<0.000000e+00> : vector<16xf32>
    %207 = vector.multi_reduction <add>, %197, %cst_81 [1] : vector<16x16xf32> to vector<16xf32>
    %208 = vector.shape_cast %207 : vector<16xf32> to vector<16x1xf32>
    %209 = arith.addf %167, %208 : vector<16x1xf32>
    %c0_82 = arith.constant 0 : index
    %c0_83 = arith.constant 0 : index
    %c0_84 = arith.constant 0 : index
    %c0_85 = arith.constant 0 : index
    %c0_86 = arith.constant 0 : index
    %210 = vector.load %arg6[%c0_82, %c0_83, %c0_84, %c0_85, %c0_86] : memref<2x2x2x16x16xf32, #tpu.memory_space<vmem>>, vector<1x1x1x16x16xf32>
    %211 = vector.shape_cast %210 : vector<1x1x1x16x16xf32> to vector<16x16xf32>
    %cst_87 = arith.constant dense<0.000000e+00> : vector<16x16xf32>
    %212 = tpu.matmul %164, %211, %cst_87 {dimension_numbers = #tpu.dot_dimension_numbers<[1], [0], [0], [1], [0, 0, 1, 1], [], []>} : vector<16x16xf32>, vector<16x16xf32>, vector<16x16xf32> -> vector<16x16xf32>
    %c0_88 = arith.constant 0 : index
    %c1_89 = arith.constant 1 : index
    %c0_90 = arith.constant 0 : index
    %c0_91 = arith.constant 0 : index
    %c0_92 = arith.constant 0 : index
    %213 = vector.load %arg6[%c0_88, %c1_89, %c0_90, %c0_91, %c0_92] : memref<2x2x2x16x16xf32, #tpu.memory_space<vmem>>, vector<1x1x1x16x16xf32>
    %214 = vector.shape_cast %213 : vector<1x1x1x16x16xf32> to vector<16x16xf32>
    %cst_93 = arith.constant dense<0.000000e+00> : vector<16x16xf32>
    %215 = tpu.matmul %206, %214, %cst_93 {dimension_numbers = #tpu.dot_dimension_numbers<[1], [0], [0], [1], [0, 0, 1, 1], [], []>} : vector<16x16xf32>, vector<16x16xf32>, vector<16x16xf32> -> vector<16x16xf32>
    %216 = arith.addf %212, %215 : vector<16x16xf32>
    %c0_94 = arith.constant 0 : index
    %c0_95 = arith.constant 0 : index
    %c1_96 = arith.constant 1 : index
    %c0_97 = arith.constant 0 : index
    %c0_98 = arith.constant 0 : index
    %217 = vector.load %arg6[%c0_94, %c0_95, %c1_96, %c0_97, %c0_98] : memref<2x2x2x16x16xf32, #tpu.memory_space<vmem>>, vector<1x1x1x16x16xf32>
    %218 = vector.shape_cast %217 : vector<1x1x1x16x16xf32> to vector<16x16xf32>
    %cst_99 = arith.constant dense<0.000000e+00> : vector<16x16xf32>
    %219 = tpu.matmul %164, %218, %cst_99 {dimension_numbers = #tpu.dot_dimension_numbers<[1], [0], [0], [1], [0, 0, 1, 1], [], []>} : vector<16x16xf32>, vector<16x16xf32>, vector<16x16xf32> -> vector<16x16xf32>
    %c0_100 = arith.constant 0 : index
    %c1_101 = arith.constant 1 : index
    %c1_102 = arith.constant 1 : index
    %c0_103 = arith.constant 0 : index
    %c0_104 = arith.constant 0 : index
    %220 = vector.load %arg6[%c0_100, %c1_101, %c1_102, %c0_103, %c0_104] : memref<2x2x2x16x16xf32, #tpu.memory_space<vmem>>, vector<1x1x1x16x16xf32>
    %221 = vector.shape_cast %220 : vector<1x1x1x16x16xf32> to vector<16x16xf32>
    %cst_105 = arith.constant dense<0.000000e+00> : vector<16x16xf32>
    %222 = tpu.matmul %206, %221, %cst_105 {dimension_numbers = #tpu.dot_dimension_numbers<[1], [0], [0], [1], [0, 0, 1, 1], [], []>} : vector<16x16xf32>, vector<16x16xf32>, vector<16x16xf32> -> vector<16x16xf32>
    %223 = arith.addf %219, %222 : vector<16x16xf32>
    %224 = vector.extract_strided_slice %216 {offsets = [0, 0], sizes = [8, 16], strides = [1, 1]} : vector<16x16xf32> to vector<8x16xf32>
    %cst_106 = arith.constant dense<0.000000e+00> : vector<16xf32>
    %225 = vector.multi_reduction <add>, %224, %cst_106 [0] : vector<8x16xf32> to vector<16xf32>
    %226 = vector.shape_cast %225 : vector<16xf32> to vector<1x16xf32>
    %cst_107 = arith.constant 8.000000e+00 : f32
    %227 = vector.broadcast %cst_107 : f32 to vector<1x16xf32>
    %228 = arith.divf %226, %227 : vector<1x16xf32>
    %229 = vector.broadcast %228 : vector<1x16xf32> to vector<8x16xf32>
    %230 = arith.subf %224, %229 : vector<8x16xf32>
    %231 = arith.mulf %230, %230 : vector<8x16xf32>
    %cst_108 = arith.constant dense<0.000000e+00> : vector<16xf32>
    %232 = vector.multi_reduction <add>, %231, %cst_108 [0] : vector<8x16xf32> to vector<16xf32>
    %233 = vector.shape_cast %232 : vector<16xf32> to vector<1x16xf32>
    %cst_109 = arith.constant 0.142857149 : f32
    %234 = vector.broadcast %cst_109 : f32 to vector<1x16xf32>
    %235 = arith.mulf %233, %234 : vector<1x16xf32>
    %236 = math.sqrt %235 : vector<1x16xf32>
    %cst_110 = arith.constant 9.99999997E-7 : f32
    %237 = vector.broadcast %cst_110 : f32 to vector<1x16xf32>
    %238 = arith.addf %236, %237 : vector<1x16xf32>
    %239 = tpu.reciprocal %238 {approx = true} : vector<1x16xf32> -> vector<1x16xf32>
    %240 = vector.broadcast %228 : vector<1x16xf32> to vector<8x16xf32>
    %241 = arith.subf %224, %240 : vector<8x16xf32>
    %242 = vector.broadcast %239 : vector<1x16xf32> to vector<8x16xf32>
    %243 = arith.mulf %242, %241 : vector<8x16xf32>
    %cst_111 = arith.constant 9.99999997E-7 : f32
    %244 = vector.broadcast %cst_111 : f32 to vector<1x16xf32>
    %245 = arith.addf %236, %244 : vector<1x16xf32>
    %246 = math.log %245 : vector<1x16xf32>
    %cst_112 = arith.constant dense<0.000000e+00> : vector<1xf32>
    %247 = vector.multi_reduction <add>, %246, %cst_112 [1] : vector<1x16xf32> to vector<1xf32>
    %248 = vector.shape_cast %247 : vector<1xf32> to vector<1x1xf32>
    %cst_113 = arith.constant 0.000000e+00 : f32
    %249 = vector.broadcast %cst_113 : f32 to vector<1x1xf32>
    %250 = arith.subf %249, %248 : vector<1x1xf32>
    %251 = vector.shape_cast %250 : vector<1x1xf32> to vector<1x1xf32>
    %252 = vector.broadcast %251 : vector<1x1xf32> to vector<8x1xf32>
    %253 = vector.extract_strided_slice %216 {offsets = [8, 0], sizes = [8, 16], strides = [1, 1]} : vector<16x16xf32> to vector<8x16xf32>
    %cst_114 = arith.constant dense<0.000000e+00> : vector<16xf32>
    %254 = vector.multi_reduction <add>, %253, %cst_114 [0] : vector<8x16xf32> to vector<16xf32>
    %255 = vector.shape_cast %254 : vector<16xf32> to vector<1x16xf32>
    %cst_115 = arith.constant 8.000000e+00 : f32
    %256 = vector.broadcast %cst_115 : f32 to vector<1x16xf32>
    %257 = arith.divf %255, %256 : vector<1x16xf32>
    %258 = vector.broadcast %257 : vector<1x16xf32> to vector<8x16xf32>
    %259 = arith.subf %253, %258 : vector<8x16xf32>
    %260 = arith.mulf %259, %259 : vector<8x16xf32>
    %cst_116 = arith.constant dense<0.000000e+00> : vector<16xf32>
    %261 = vector.multi_reduction <add>, %260, %cst_116 [0] : vector<8x16xf32> to vector<16xf32>
    %262 = vector.shape_cast %261 : vector<16xf32> to vector<1x16xf32>
    %cst_117 = arith.constant 0.142857149 : f32
    %263 = vector.broadcast %cst_117 : f32 to vector<1x16xf32>
    %264 = arith.mulf %262, %263 : vector<1x16xf32>
    %265 = math.sqrt %264 : vector<1x16xf32>
    %cst_118 = arith.constant 9.99999997E-7 : f32
    %266 = vector.broadcast %cst_118 : f32 to vector<1x16xf32>
    %267 = arith.addf %265, %266 : vector<1x16xf32>
    %268 = tpu.reciprocal %267 {approx = true} : vector<1x16xf32> -> vector<1x16xf32>
    %269 = vector.broadcast %257 : vector<1x16xf32> to vector<8x16xf32>
    %270 = arith.subf %253, %269 : vector<8x16xf32>
    %271 = vector.broadcast %268 : vector<1x16xf32> to vector<8x16xf32>
    %272 = arith.mulf %271, %270 : vector<8x16xf32>
    %cst_119 = arith.constant 9.99999997E-7 : f32
    %273 = vector.broadcast %cst_119 : f32 to vector<1x16xf32>
    %274 = arith.addf %265, %273 : vector<1x16xf32>
    %275 = math.log %274 : vector<1x16xf32>
    %cst_120 = arith.constant dense<0.000000e+00> : vector<1xf32>
    %276 = vector.multi_reduction <add>, %275, %cst_120 [1] : vector<1x16xf32> to vector<1xf32>
    %277 = vector.shape_cast %276 : vector<1xf32> to vector<1x1xf32>
    %cst_121 = arith.constant 0.000000e+00 : f32
    %278 = vector.broadcast %cst_121 : f32 to vector<1x1xf32>
    %279 = arith.subf %278, %277 : vector<1x1xf32>
    %280 = vector.shape_cast %279 : vector<1x1xf32> to vector<1x1xf32>
    %281 = vector.broadcast %280 : vector<1x1xf32> to vector<8x1xf32>
    %282 = tpu.concatenate %243, %272 in 0 : vector<8x16xf32>, vector<8x16xf32> -> vector<16x16xf32>
    %283 = tpu.concatenate %252, %281 in 0 : vector<8x1xf32>, vector<8x1xf32> -> vector<16x1xf32>
    %284 = vector.extract_strided_slice %223 {offsets = [0, 0], sizes = [8, 16], strides = [1, 1]} : vector<16x16xf32> to vector<8x16xf32>
    %cst_122 = arith.constant dense<0.000000e+00> : vector<16xf32>
    %285 = vector.multi_reduction <add>, %284, %cst_122 [0] : vector<8x16xf32> to vector<16xf32>
    %286 = vector.shape_cast %285 : vector<16xf32> to vector<1x16xf32>
    %cst_123 = arith.constant 8.000000e+00 : f32
    %287 = vector.broadcast %cst_123 : f32 to vector<1x16xf32>
    %288 = arith.divf %286, %287 : vector<1x16xf32>
    %289 = vector.broadcast %288 : vector<1x16xf32> to vector<8x16xf32>
    %290 = arith.subf %284, %289 : vector<8x16xf32>
    %291 = arith.mulf %290, %290 : vector<8x16xf32>
    %cst_124 = arith.constant dense<0.000000e+00> : vector<16xf32>
    %292 = vector.multi_reduction <add>, %291, %cst_124 [0] : vector<8x16xf32> to vector<16xf32>
    %293 = vector.shape_cast %292 : vector<16xf32> to vector<1x16xf32>
    %cst_125 = arith.constant 0.142857149 : f32
    %294 = vector.broadcast %cst_125 : f32 to vector<1x16xf32>
    %295 = arith.mulf %293, %294 : vector<1x16xf32>
    %296 = math.sqrt %295 : vector<1x16xf32>
    %cst_126 = arith.constant 9.99999997E-7 : f32
    %297 = vector.broadcast %cst_126 : f32 to vector<1x16xf32>
    %298 = arith.addf %296, %297 : vector<1x16xf32>
    %299 = tpu.reciprocal %298 {approx = true} : vector<1x16xf32> -> vector<1x16xf32>
    %300 = vector.broadcast %288 : vector<1x16xf32> to vector<8x16xf32>
    %301 = arith.subf %284, %300 : vector<8x16xf32>
    %302 = vector.broadcast %299 : vector<1x16xf32> to vector<8x16xf32>
    %303 = arith.mulf %302, %301 : vector<8x16xf32>
    %cst_127 = arith.constant 9.99999997E-7 : f32
    %304 = vector.broadcast %cst_127 : f32 to vector<1x16xf32>
    %305 = arith.addf %296, %304 : vector<1x16xf32>
    %306 = math.log %305 : vector<1x16xf32>
    %cst_128 = arith.constant dense<0.000000e+00> : vector<1xf32>
    %307 = vector.multi_reduction <add>, %306, %cst_128 [1] : vector<1x16xf32> to vector<1xf32>
    %308 = vector.shape_cast %307 : vector<1xf32> to vector<1x1xf32>
    %cst_129 = arith.constant 0.000000e+00 : f32
    %309 = vector.broadcast %cst_129 : f32 to vector<1x1xf32>
    %310 = arith.subf %309, %308 : vector<1x1xf32>
    %311 = vector.shape_cast %310 : vector<1x1xf32> to vector<1x1xf32>
    %312 = vector.broadcast %311 : vector<1x1xf32> to vector<8x1xf32>
    %313 = vector.extract_strided_slice %223 {offsets = [8, 0], sizes = [8, 16], strides = [1, 1]} : vector<16x16xf32> to vector<8x16xf32>
    %cst_130 = arith.constant dense<0.000000e+00> : vector<16xf32>
    %314 = vector.multi_reduction <add>, %313, %cst_130 [0] : vector<8x16xf32> to vector<16xf32>
    %315 = vector.shape_cast %314 : vector<16xf32> to vector<1x16xf32>
    %cst_131 = arith.constant 8.000000e+00 : f32
    %316 = vector.broadcast %cst_131 : f32 to vector<1x16xf32>
    %317 = arith.divf %315, %316 : vector<1x16xf32>
    %318 = vector.broadcast %317 : vector<1x16xf32> to vector<8x16xf32>
    %319 = arith.subf %313, %318 : vector<8x16xf32>
    %320 = arith.mulf %319, %319 : vector<8x16xf32>
    %cst_132 = arith.constant dense<0.000000e+00> : vector<16xf32>
    %321 = vector.multi_reduction <add>, %320, %cst_132 [0] : vector<8x16xf32> to vector<16xf32>
    %322 = vector.shape_cast %321 : vector<16xf32> to vector<1x16xf32>
    %cst_133 = arith.constant 0.142857149 : f32
    %323 = vector.broadcast %cst_133 : f32 to vector<1x16xf32>
    %324 = arith.mulf %322, %323 : vector<1x16xf32>
    %325 = math.sqrt %324 : vector<1x16xf32>
    %cst_134 = arith.constant 9.99999997E-7 : f32
    %326 = vector.broadcast %cst_134 : f32 to vector<1x16xf32>
    %327 = arith.addf %325, %326 : vector<1x16xf32>
    %328 = tpu.reciprocal %327 {approx = true} : vector<1x16xf32> -> vector<1x16xf32>
    %329 = vector.broadcast %317 : vector<1x16xf32> to vector<8x16xf32>
    %330 = arith.subf %313, %329 : vector<8x16xf32>
    %331 = vector.broadcast %328 : vector<1x16xf32> to vector<8x16xf32>
    %332 = arith.mulf %331, %330 : vector<8x16xf32>
    %cst_135 = arith.constant 9.99999997E-7 : f32
    %333 = vector.broadcast %cst_135 : f32 to vector<1x16xf32>
    %334 = arith.addf %325, %333 : vector<1x16xf32>
    %335 = math.log %334 : vector<1x16xf32>
    %cst_136 = arith.constant dense<0.000000e+00> : vector<1xf32>
    %336 = vector.multi_reduction <add>, %335, %cst_136 [1] : vector<1x16xf32> to vector<1xf32>
    %337 = vector.shape_cast %336 : vector<1xf32> to vector<1x1xf32>
    %cst_137 = arith.constant 0.000000e+00 : f32
    %338 = vector.broadcast %cst_137 : f32 to vector<1x1xf32>
    %339 = arith.subf %338, %337 : vector<1x1xf32>
    %340 = vector.shape_cast %339 : vector<1x1xf32> to vector<1x1xf32>
    %341 = vector.broadcast %340 : vector<1x1xf32> to vector<8x1xf32>
    %342 = tpu.concatenate %303, %332 in 0 : vector<8x16xf32>, vector<8x16xf32> -> vector<16x16xf32>
    %343 = tpu.concatenate %312, %341 in 0 : vector<8x1xf32>, vector<8x1xf32> -> vector<16x1xf32>
    %344 = arith.addf %209, %283 : vector<16x1xf32>
    %345 = arith.addf %344, %343 : vector<16x1xf32>
    %c2 = arith.constant 2 : index
    %c0_138 = arith.constant 0 : index
    %c0_139 = arith.constant 0 : index
    %346 = vector.load %arg5[%c2, %c0_138, %c0_139] : memref<4x4x128xf32, #tpu.memory_space<vmem>>, vector<1x4x128xf32>
    %347 = vector.shape_cast %346 : vector<1x4x128xf32> to vector<4x128xf32>
    %c2_140 = arith.constant 2 : index
    %c0_141 = arith.constant 0 : index
    %c0_142 = arith.constant 0 : index
    %348 = vector.load %arg2[%c2_140, %c0_141, %c0_142] : memref<4x16x128xbf16, #tpu.memory_space<vmem>>, vector<1x16x128xbf16>
    %349 = vector.shape_cast %348 : vector<1x16x128xbf16> to vector<16x128xbf16>
    %350 = arith.truncf %282 : vector<16x16xf32> to vector<16x16xbf16>
    %cst_143 = arith.constant dense<0.000000e+00> : vector<16x128xf32>
    %351 = tpu.matmul %350, %349, %cst_143 {dimension_numbers = #tpu.dot_dimension_numbers<[1], [0], [0], [1], [0, 0, 1, 1], [], []>} : vector<16x16xbf16>, vector<16x128xbf16>, vector<16x128xf32> -> vector<16x128xf32>
    %352 = vector.extract_strided_slice %347 {offsets = [0, 0], sizes = [1, 128], strides = [1, 1]} : vector<4x128xf32> to vector<1x128xf32>
    %353 = vector.broadcast %352 : vector<1x128xf32> to vector<16x128xf32>
    %354 = arith.addf %351, %353 : vector<16x128xf32>
    %cst_144 = arith.constant 0.00999999977 : f32
    %355 = vector.broadcast %cst_144 : f32 to vector<16x128xf32>
    %356 = arith.mulf %355, %354 : vector<16x128xf32>
    %357 = arith.maximumf %354, %356 : vector<16x128xf32>
    %c2_145 = arith.constant 2 : index
    %c0_146 = arith.constant 0 : index
    %c0_147 = arith.constant 0 : index
    %c0_148 = arith.constant 0 : index
    %358 = vector.load %arg3[%c2_145, %c0_146, %c0_147, %c0_148] : memref<4x1x128x128xbf16, #tpu.memory_space<vmem>>, vector<1x1x128x128xbf16>
    %359 = vector.shape_cast %358 : vector<1x1x128x128xbf16> to vector<128x128xbf16>
    %360 = arith.truncf %357 : vector<16x128xf32> to vector<16x128xbf16>
    %cst_149 = arith.constant dense<0.000000e+00> : vector<16x128xf32>
    %361 = tpu.matmul %360, %359, %cst_149 {dimension_numbers = #tpu.dot_dimension_numbers<[1], [0], [0], [1], [0, 0, 1, 1], [], []>} : vector<16x128xbf16>, vector<128x128xbf16>, vector<16x128xf32> -> vector<16x128xf32>
    %362 = vector.extract_strided_slice %347 {offsets = [1, 0], sizes = [1, 128], strides = [1, 1]} : vector<4x128xf32> to vector<1x128xf32>
    %363 = vector.broadcast %362 : vector<1x128xf32> to vector<16x128xf32>
    %364 = arith.addf %361, %363 : vector<16x128xf32>
    %cst_150 = arith.constant 0.00999999977 : f32
    %365 = vector.broadcast %cst_150 : f32 to vector<16x128xf32>
    %366 = arith.mulf %365, %364 : vector<16x128xf32>
    %367 = arith.maximumf %364, %366 : vector<16x128xf32>
    %368 = arith.truncf %367 : vector<16x128xf32> to vector<16x128xbf16>
    %c2_151 = arith.constant 2 : index
    %c0_152 = arith.constant 0 : index
    %c0_153 = arith.constant 0 : index
    %c0_154 = arith.constant 0 : index
    %369 = vector.load %arg4[%c2_151, %c0_152, %c0_153, %c0_154] : memref<4x2x128x16xbf16, #tpu.memory_space<vmem>>, vector<1x1x128x16xbf16>
    %370 = vector.shape_cast %369 : vector<1x1x128x16xbf16> to vector<128x16xbf16>
    %cst_155 = arith.constant dense<0.000000e+00> : vector<16x16xf32>
    %371 = tpu.matmul %368, %370, %cst_155 {dimension_numbers = #tpu.dot_dimension_numbers<[1], [0], [0], [1], [0, 0, 1, 1], [], []>} : vector<16x128xbf16>, vector<128x16xbf16>, vector<16x16xf32> -> vector<16x16xf32>
    %372 = vector.extract_strided_slice %347 {offsets = [2, 0], sizes = [1, 16], strides = [1, 1]} : vector<4x128xf32> to vector<1x16xf32>
    %373 = vector.broadcast %372 : vector<1x16xf32> to vector<16x16xf32>
    %374 = arith.addf %371, %373 : vector<16x16xf32>
    %375 = math.tanh %374 : vector<16x16xf32>
    %c2_156 = arith.constant 2 : index
    %c1_157 = arith.constant 1 : index
    %c0_158 = arith.constant 0 : index
    %c0_159 = arith.constant 0 : index
    %376 = vector.load %arg4[%c2_156, %c1_157, %c0_158, %c0_159] : memref<4x2x128x16xbf16, #tpu.memory_space<vmem>>, vector<1x1x128x16xbf16>
    %377 = vector.shape_cast %376 : vector<1x1x128x16xbf16> to vector<128x16xbf16>
    %cst_160 = arith.constant dense<0.000000e+00> : vector<16x16xf32>
    %378 = tpu.matmul %368, %377, %cst_160 {dimension_numbers = #tpu.dot_dimension_numbers<[1], [0], [0], [1], [0, 0, 1, 1], [], []>} : vector<16x128xbf16>, vector<128x16xbf16>, vector<16x16xf32> -> vector<16x16xf32>
    %379 = vector.extract_strided_slice %347 {offsets = [3, 0], sizes = [1, 16], strides = [1, 1]} : vector<4x128xf32> to vector<1x16xf32>
    %380 = vector.broadcast %379 : vector<1x16xf32> to vector<16x16xf32>
    %381 = arith.addf %378, %380 : vector<16x16xf32>
    %382 = math.exp %375 : vector<16x16xf32>
    %383 = arith.mulf %342, %382 : vector<16x16xf32>
    %384 = arith.addf %383, %381 : vector<16x16xf32>
    %cst_161 = arith.constant dense<0.000000e+00> : vector<16xf32>
    %385 = vector.multi_reduction <add>, %375, %cst_161 [1] : vector<16x16xf32> to vector<16xf32>
    %386 = vector.shape_cast %385 : vector<16xf32> to vector<16x1xf32>
    %387 = arith.addf %345, %386 : vector<16x1xf32>
    %c3 = arith.constant 3 : index
    %c0_162 = arith.constant 0 : index
    %c0_163 = arith.constant 0 : index
    %388 = vector.load %arg5[%c3, %c0_162, %c0_163] : memref<4x4x128xf32, #tpu.memory_space<vmem>>, vector<1x4x128xf32>
    %389 = vector.shape_cast %388 : vector<1x4x128xf32> to vector<4x128xf32>
    %c3_164 = arith.constant 3 : index
    %c0_165 = arith.constant 0 : index
    %c0_166 = arith.constant 0 : index
    %390 = vector.load %arg2[%c3_164, %c0_165, %c0_166] : memref<4x16x128xbf16, #tpu.memory_space<vmem>>, vector<1x16x128xbf16>
    %391 = vector.shape_cast %390 : vector<1x16x128xbf16> to vector<16x128xbf16>
    %392 = arith.truncf %384 : vector<16x16xf32> to vector<16x16xbf16>
    %cst_167 = arith.constant dense<0.000000e+00> : vector<16x128xf32>
    %393 = tpu.matmul %392, %391, %cst_167 {dimension_numbers = #tpu.dot_dimension_numbers<[1], [0], [0], [1], [0, 0, 1, 1], [], []>} : vector<16x16xbf16>, vector<16x128xbf16>, vector<16x128xf32> -> vector<16x128xf32>
    %394 = vector.extract_strided_slice %389 {offsets = [0, 0], sizes = [1, 128], strides = [1, 1]} : vector<4x128xf32> to vector<1x128xf32>
    %395 = vector.broadcast %394 : vector<1x128xf32> to vector<16x128xf32>
    %396 = arith.addf %393, %395 : vector<16x128xf32>
    %cst_168 = arith.constant 0.00999999977 : f32
    %397 = vector.broadcast %cst_168 : f32 to vector<16x128xf32>
    %398 = arith.mulf %397, %396 : vector<16x128xf32>
    %399 = arith.maximumf %396, %398 : vector<16x128xf32>
    %c3_169 = arith.constant 3 : index
    %c0_170 = arith.constant 0 : index
    %c0_171 = arith.constant 0 : index
    %c0_172 = arith.constant 0 : index
    %400 = vector.load %arg3[%c3_169, %c0_170, %c0_171, %c0_172] : memref<4x1x128x128xbf16, #tpu.memory_space<vmem>>, vector<1x1x128x128xbf16>
    %401 = vector.shape_cast %400 : vector<1x1x128x128xbf16> to vector<128x128xbf16>
    %402 = arith.truncf %399 : vector<16x128xf32> to vector<16x128xbf16>
    %cst_173 = arith.constant dense<0.000000e+00> : vector<16x128xf32>
    %403 = tpu.matmul %402, %401, %cst_173 {dimension_numbers = #tpu.dot_dimension_numbers<[1], [0], [0], [1], [0, 0, 1, 1], [], []>} : vector<16x128xbf16>, vector<128x128xbf16>, vector<16x128xf32> -> vector<16x128xf32>
    %404 = vector.extract_strided_slice %389 {offsets = [1, 0], sizes = [1, 128], strides = [1, 1]} : vector<4x128xf32> to vector<1x128xf32>
    %405 = vector.broadcast %404 : vector<1x128xf32> to vector<16x128xf32>
    %406 = arith.addf %403, %405 : vector<16x128xf32>
    %cst_174 = arith.constant 0.00999999977 : f32
    %407 = vector.broadcast %cst_174 : f32 to vector<16x128xf32>
    %408 = arith.mulf %407, %406 : vector<16x128xf32>
    %409 = arith.maximumf %406, %408 : vector<16x128xf32>
    %410 = arith.truncf %409 : vector<16x128xf32> to vector<16x128xbf16>
    %c3_175 = arith.constant 3 : index
    %c0_176 = arith.constant 0 : index
    %c0_177 = arith.constant 0 : index
    %c0_178 = arith.constant 0 : index
    %411 = vector.load %arg4[%c3_175, %c0_176, %c0_177, %c0_178] : memref<4x2x128x16xbf16, #tpu.memory_space<vmem>>, vector<1x1x128x16xbf16>
    %412 = vector.shape_cast %411 : vector<1x1x128x16xbf16> to vector<128x16xbf16>
    %cst_179 = arith.constant dense<0.000000e+00> : vector<16x16xf32>
    %413 = tpu.matmul %410, %412, %cst_179 {dimension_numbers = #tpu.dot_dimension_numbers<[1], [0], [0], [1], [0, 0, 1, 1], [], []>} : vector<16x128xbf16>, vector<128x16xbf16>, vector<16x16xf32> -> vector<16x16xf32>
    %414 = vector.extract_strided_slice %389 {offsets = [2, 0], sizes = [1, 16], strides = [1, 1]} : vector<4x128xf32> to vector<1x16xf32>
    %415 = vector.broadcast %414 : vector<1x16xf32> to vector<16x16xf32>
    %416 = arith.addf %413, %415 : vector<16x16xf32>
    %417 = math.tanh %416 : vector<16x16xf32>
    %c3_180 = arith.constant 3 : index
    %c1_181 = arith.constant 1 : index
    %c0_182 = arith.constant 0 : index
    %c0_183 = arith.constant 0 : index
    %418 = vector.load %arg4[%c3_180, %c1_181, %c0_182, %c0_183] : memref<4x2x128x16xbf16, #tpu.memory_space<vmem>>, vector<1x1x128x16xbf16>
    %419 = vector.shape_cast %418 : vector<1x1x128x16xbf16> to vector<128x16xbf16>
    %cst_184 = arith.constant dense<0.000000e+00> : vector<16x16xf32>
    %420 = tpu.matmul %410, %419, %cst_184 {dimension_numbers = #tpu.dot_dimension_numbers<[1], [0], [0], [1], [0, 0, 1, 1], [], []>} : vector<16x128xbf16>, vector<128x16xbf16>, vector<16x16xf32> -> vector<16x16xf32>
    %421 = vector.extract_strided_slice %389 {offsets = [3, 0], sizes = [1, 16], strides = [1, 1]} : vector<4x128xf32> to vector<1x16xf32>
    %422 = vector.broadcast %421 : vector<1x16xf32> to vector<16x16xf32>
    %423 = arith.addf %420, %422 : vector<16x16xf32>
    %424 = math.exp %417 : vector<16x16xf32>
    %425 = arith.mulf %282, %424 : vector<16x16xf32>
    %426 = arith.addf %425, %423 : vector<16x16xf32>
    %cst_185 = arith.constant dense<0.000000e+00> : vector<16xf32>
    %427 = vector.multi_reduction <add>, %417, %cst_185 [1] : vector<16x16xf32> to vector<16xf32>
    %428 = vector.shape_cast %427 : vector<16xf32> to vector<16x1xf32>
    %429 = arith.addf %387, %428 : vector<16x1xf32>
    %c1_186 = arith.constant 1 : index
    %c0_187 = arith.constant 0 : index
    %c0_188 = arith.constant 0 : index
    %c0_189 = arith.constant 0 : index
    %c0_190 = arith.constant 0 : index
    %430 = vector.load %arg6[%c1_186, %c0_187, %c0_188, %c0_189, %c0_190] : memref<2x2x2x16x16xf32, #tpu.memory_space<vmem>>, vector<1x1x1x16x16xf32>
    %431 = vector.shape_cast %430 : vector<1x1x1x16x16xf32> to vector<16x16xf32>
    %cst_191 = arith.constant dense<0.000000e+00> : vector<16x16xf32>
    %432 = tpu.matmul %384, %431, %cst_191 {dimension_numbers = #tpu.dot_dimension_numbers<[1], [0], [0], [1], [0, 0, 1, 1], [], []>} : vector<16x16xf32>, vector<16x16xf32>, vector<16x16xf32> -> vector<16x16xf32>
    %c1_192 = arith.constant 1 : index
    %c1_193 = arith.constant 1 : index
    %c0_194 = arith.constant 0 : index
    %c0_195 = arith.constant 0 : index
    %c0_196 = arith.constant 0 : index
    %433 = vector.load %arg6[%c1_192, %c1_193, %c0_194, %c0_195, %c0_196] : memref<2x2x2x16x16xf32, #tpu.memory_space<vmem>>, vector<1x1x1x16x16xf32>
    %434 = vector.shape_cast %433 : vector<1x1x1x16x16xf32> to vector<16x16xf32>
    %cst_197 = arith.constant dense<0.000000e+00> : vector<16x16xf32>
    %435 = tpu.matmul %426, %434, %cst_197 {dimension_numbers = #tpu.dot_dimension_numbers<[1], [0], [0], [1], [0, 0, 1, 1], [], []>} : vector<16x16xf32>, vector<16x16xf32>, vector<16x16xf32> -> vector<16x16xf32>
    %436 = arith.addf %432, %435 : vector<16x16xf32>
    %c1_198 = arith.constant 1 : index
    %c0_199 = arith.constant 0 : index
    %c1_200 = arith.constant 1 : index
    %c0_201 = arith.constant 0 : index
    %c0_202 = arith.constant 0 : index
    %437 = vector.load %arg6[%c1_198, %c0_199, %c1_200, %c0_201, %c0_202] : memref<2x2x2x16x16xf32, #tpu.memory_space<vmem>>, vector<1x1x1x16x16xf32>
    %438 = vector.shape_cast %437 : vector<1x1x1x16x16xf32> to vector<16x16xf32>
    %cst_203 = arith.constant dense<0.000000e+00> : vector<16x16xf32>
    %439 = tpu.matmul %384, %438, %cst_203 {dimension_numbers = #tpu.dot_dimension_numbers<[1], [0], [0], [1], [0, 0, 1, 1], [], []>} : vector<16x16xf32>, vector<16x16xf32>, vector<16x16xf32> -> vector<16x16xf32>
    %c1_204 = arith.constant 1 : index
    %c1_205 = arith.constant 1 : index
    %c1_206 = arith.constant 1 : index
    %c0_207 = arith.constant 0 : index
    %c0_208 = arith.constant 0 : index
    %440 = vector.load %arg6[%c1_204, %c1_205, %c1_206, %c0_207, %c0_208] : memref<2x2x2x16x16xf32, #tpu.memory_space<vmem>>, vector<1x1x1x16x16xf32>
    %441 = vector.shape_cast %440 : vector<1x1x1x16x16xf32> to vector<16x16xf32>
    %cst_209 = arith.constant dense<0.000000e+00> : vector<16x16xf32>
    %442 = tpu.matmul %426, %441, %cst_209 {dimension_numbers = #tpu.dot_dimension_numbers<[1], [0], [0], [1], [0, 0, 1, 1], [], []>} : vector<16x16xf32>, vector<16x16xf32>, vector<16x16xf32> -> vector<16x16xf32>
    %443 = arith.addf %439, %442 : vector<16x16xf32>
    %444 = tpu.concatenate %436, %443 in 1 : vector<16x16xf32>, vector<16x16xf32> -> vector<16x32xf32>
    %c0_210 = arith.constant 0 : index
    %c0_211 = arith.constant 0 : index
    %445 = vector.load %arg7[%c0_210, %c0_211] : memref<16x32xf32, #tpu.memory_space<vmem>>, vector<16x32xf32>
    tpu.vector_store %arg7[%c0_210, %c0_211], %444 {strides = array<i32>} : memref<16x32xf32, #tpu.memory_space<vmem>>, vector<16x32xf32>,
    %c0_212 = arith.constant 0 : index
    %c0_213 = arith.constant 0 : index
    %446 = vector.load %arg8[%c0_212, %c0_213] : memref<16x1xf32, #tpu.memory_space<vmem>>, vector<16x1xf32>
    tpu.vector_store %arg8[%c0_212, %c0_213], %429 {strides = array<i32>} : memref<16x1xf32, #tpu.memory_space<vmem>>, vector<16x1xf32>,
    %c0_214 = arith.constant 0 : index
    %c0_215 = arith.constant 0 : index
    %447 = vector.load %arg1[%c0_214, %c0_215] : memref<4x16xf32, #tpu.memory_space<vmem>>, vector<4x16xf32>
    %448 = vector.extract_strided_slice %447 {offsets = [0, 0], sizes = [1, 16], strides = [1, 1]} : vector<4x16xf32> to vector<1x16xf32>
    %449 = vector.extract_strided_slice %447 {offsets = [1, 0], sizes = [1, 16], strides = [1, 1]} : vector<4x16xf32> to vector<1x16xf32>
    %450 = vector.extract_strided_slice %447 {offsets = [2, 0], sizes = [1, 16], strides = [1, 1]} : vector<4x16xf32> to vector<1x16xf32>
    %451 = vector.extract_strided_slice %447 {offsets = [3, 0], sizes = [1, 16], strides = [1, 1]} : vector<4x16xf32> to vector<1x16xf32>
    %452 = vector.extract_strided_slice %436 {offsets = [0, 0], sizes = [8, 16], strides = [1, 1]} : vector<16x16xf32> to vector<8x16xf32>
    %453 = vector.extract_strided_slice %443 {offsets = [0, 0], sizes = [8, 16], strides = [1, 1]} : vector<16x16xf32> to vector<8x16xf32>
    %454 = vector.extract_strided_slice %436 {offsets = [8, 0], sizes = [8, 16], strides = [1, 1]} : vector<16x16xf32> to vector<8x16xf32>
    %455 = vector.extract_strided_slice %443 {offsets = [8, 0], sizes = [8, 16], strides = [1, 1]} : vector<16x16xf32> to vector<8x16xf32>
    %456 = vector.extract_strided_slice %429 {offsets = [0, 0], sizes = [8, 1], strides = [1, 1]} : vector<16x1xf32> to vector<8x1xf32>
    %457 = vector.extract_strided_slice %429 {offsets = [8, 0], sizes = [8, 1], strides = [1, 1]} : vector<16x1xf32> to vector<8x1xf32>
    %458 = arith.mulf %452, %452 : vector<8x16xf32>
    %cst_216 = arith.constant dense<0.000000e+00> : vector<8xf32>
    %459 = vector.multi_reduction <add>, %458, %cst_216 [1] : vector<8x16xf32> to vector<8xf32>
    %460 = vector.shape_cast %459 : vector<8xf32> to vector<8x1xf32>
    %461 = arith.mulf %453, %453 : vector<8x16xf32>
    %cst_217 = arith.constant dense<0.000000e+00> : vector<8xf32>
    %462 = vector.multi_reduction <add>, %461, %cst_217 [1] : vector<8x16xf32> to vector<8xf32>
    %463 = vector.shape_cast %462 : vector<8xf32> to vector<8x1xf32>
    %464 = arith.addf %460, %463 : vector<8x1xf32>
    %cst_218 = arith.constant 5.000000e-01 : f32
    %465 = vector.broadcast %cst_218 : f32 to vector<8x1xf32>
    %466 = arith.mulf %465, %464 : vector<8x1xf32>
    %467 = arith.subf %466, %456 : vector<8x1xf32>
    %cst_219 = arith.constant dense<0.000000e+00> : vector<1xf32>
    %468 = vector.multi_reduction <add>, %467, %cst_219 [0] : vector<8x1xf32> to vector<1xf32>
    %469 = vector.shape_cast %468 : vector<1xf32> to vector<1x1xf32>
    %cst_220 = arith.constant 8.000000e+00 : f32
    %470 = vector.broadcast %cst_220 : f32 to vector<1x1xf32>
    %471 = arith.divf %469, %470 : vector<1x1xf32>
    %472 = vector.broadcast %448 : vector<1x16xf32> to vector<8x16xf32>
    %473 = arith.mulf %472, %452 : vector<8x16xf32>
    %474 = arith.subf %454, %473 : vector<8x16xf32>
    %475 = vector.broadcast %449 : vector<1x16xf32> to vector<8x16xf32>
    %476 = arith.mulf %475, %453 : vector<8x16xf32>
    %477 = arith.subf %455, %476 : vector<8x16xf32>
    %478 = arith.mulf %474, %474 : vector<8x16xf32>
    %479 = vector.broadcast %450 : vector<1x16xf32> to vector<8x16xf32>
    %480 = arith.mulf %478, %479 : vector<8x16xf32>
    %cst_221 = arith.constant dense<0.000000e+00> : vector<8xf32>
    %481 = vector.multi_reduction <add>, %480, %cst_221 [1] : vector<8x16xf32> to vector<8xf32>
    %482 = vector.shape_cast %481 : vector<8xf32> to vector<8x1xf32>
    %483 = arith.mulf %477, %477 : vector<8x16xf32>
    %484 = vector.broadcast %451 : vector<1x16xf32> to vector<8x16xf32>
    %485 = arith.mulf %483, %484 : vector<8x16xf32>
    %cst_222 = arith.constant dense<0.000000e+00> : vector<8xf32>
    %486 = vector.multi_reduction <add>, %485, %cst_222 [1] : vector<8x16xf32> to vector<8xf32>
    %487 = vector.shape_cast %486 : vector<8xf32> to vector<8x1xf32>
    %488 = arith.addf %482, %487 : vector<8x1xf32>
    %489 = arith.subf %488, %457 : vector<8x1xf32>
    %cst_223 = arith.constant dense<0.000000e+00> : vector<1xf32>
    %490 = vector.multi_reduction <add>, %489, %cst_223 [0] : vector<8x1xf32> to vector<1xf32>
    %491 = vector.shape_cast %490 : vector<1xf32> to vector<1x1xf32>
    %cst_224 = arith.constant 8.000000e+00 : f32
    %492 = vector.broadcast %cst_224 : f32 to vector<1x1xf32>
    %493 = arith.divf %491, %492 : vector<1x1xf32>
    %494 = arith.addf %471, %493 : vector<1x1xf32>
    %495 = tpu.concatenate %494, %471, %493 in 1 : vector<1x1xf32>, vector<1x1xf32>, vector<1x1xf32> -> vector<1x3xf32>
    %c0_225 = arith.constant 0 : index
    %c0_226 = arith.constant 0 : index
    %496 = vector.load %arg9[%c0_225, %c0_226] : memref<1x3xf32, #tpu.memory_space<vmem>>, vector<1x3xf32>
    tpu.vector_store %arg9[%c0_225, %c0_226], %495 {strides = array<i32>} : memref<1x3xf32, #tpu.memory_space<vmem>>, vector<1x3xf32>,
    return
  }
}

</mosaic_0001>

<bundles_post_ra>
// kernel: factor_transformer_factor_loss.1
= control target key start
LH: loop header
LB: loop body
LE: loop exit
PB: predicated region body
PF: predicated region fallthrough
CT: control target
= control target key end

     0   :  { %vm32_vm0 = vcmask 130048   ;;  %v3720_v0 = vmov 0.0   ;;  %vm3721_vm1 = vmmov 0   ;;  %s3722_s20 = smov 16   ;;  %vm102_vm6 = vcmask 261248   ;;  %s3723_s23 = smov 112   ;;  %s4507_s2 = inlined_call_operand.vmem [shape: bf16[4,16,128], index: 2, kind: input, shape index: {}]   ;;  %s4508_s0 = inlined_call_operand.vmem [shape: f32[16,32], index: 0, kind: input, shape index: {}]   ;;  %s4509_s3 = inlined_call_operand.vmem [shape: bf16[4,1,128,128], index: 3, kind: input, shape index: {}]   ;;  %s4510_s4 = inlined_call_operand.vmem [shape: bf16[4,2,128,16], index: 4, kind: input, shape index: {}]   ;;  %s4511_s5 = inlined_call_operand.vmem [shape: f32[4,4,128], index: 5, kind: input, shape index: {}]   ;;  %s4512_s6 = inlined_call_operand.vmem [shape: f32[2,2,2,16,16], index: 6, kind: input, shape index: {}]   ;;  %s4513_s8 = inlined_call_operand.vmem [shape: f32[16,1], index: 8, kind: output, shape index: {1}]   ;;  %s4514_s1 = inlined_call_operand.vmem [shape: f32[4,16], index: 1, kind: input, shape index: {}]   ;;  %s4515_s7 = inlined_call_operand.vmem [shape: f32[16,32], index: 7, kind: output, shape index: {0}]   ;;  %s4516_s9 = inlined_call_operand.vmem [shape: f32[1,3], index: 9, kind: output, shape index: {2}]  }
   0x1   :  { %3214 = vmatprep.subr.bf16.mxu0 %v3720_v0  ;;  %v3540_v1 = vld [vmem:[%s4507_s2] sm:$0xff]   ;;  %3216 = vmatprep.mubr.msk.bf16.mxu0 %vm3721_vm1, %v3720_v0  ;;  %v3790_v3 = vld [vmem:[%s4508_s0 + $0x8] sm:$0xff]  ;;  %v3541_v6 = vld [vmem:[%s4509_s3 + $0x38] sm:$0xff]   ;;  %s3725_s17 = smov 2  }
   0x2   :  { %v3785_v2 = vld [vmem:[%s4508_s0] sm:$0xff]  ;;  %3220 = vmatprep.subr.bf16.mxu1 %v3720_v0  ;;  %3236 = vmatprep.mubr.msk.bf16.mxu1 %vm3721_vm1, %v3720_v0  ;;  %v68_v5 = vsel %vm32_vm0, %v3790_v3, 0.0  ;;  %v3542_v9 = vld [vmem:[%s4509_s3 + $0x30] sm:$0xff]   ;;  %v3543_v14 = vld [vmem:[%s4509_s3 + $0x28] sm:$0xff]  }
   0x3   :  { %3215 = vmatpush3.bf16.msra.mxu0 %v3540_v1  ;;  %v33_v4 = vsel %vm32_vm0, %v3785_v2, 0.0  ;;  %v69_v8 = vrot.slane %v68_v5, 4  ;;  %3221 = vmatpush3.bf16.msra.mxu1 %v3541_v6  ;;  %v3544_v17 = vld [vmem:[%s4509_s3 + $0x20] sm:$0xff]   ;;  %v3545_v22 = vld [vmem:[%s4509_s3 + $0x18] sm:$0xff]   ;;  %v3546_v62 = vld [vmem:[%s4509_s3 + $0x10] sm:$0xff]  }
   0x4   :  { %v34_v7 = vrot.slane %v33_v4, 4  ;;  %3240 = vmatprep.subr.bf16.mxu0 %v3720_v0  ;;  %3222 = vmatprep.subr.bf16.mxu1 %v3720_v0  ;;  %v3547_v63 = vld [vmem:[%s4509_s3 + $0x8] sm:$0xff]   ;;  %v3548_v1 = vld [vmem:[%s4509_s3] sm:$0xff]  }
   0x5   :  { %v70_v11 = vadd.f32 %v69_v8, %v68_v5  ;;  %v3551_v5 = vld [vmem:[%s4510_s4 + $0x30] sm:$0xff]   ;;  %v3553_v6 = vld [vmem:[%s4510_s4 + $0x28] sm:$0xff]   ;;  %v3557_v8 = vld [vmem:[%s4510_s4 + $0x18] sm:$0xff]  }
   0x6   :  { %v35_v10 = vadd.f32 %v34_v7, %v33_v4  ;;  %v3549_v4 = vld [vmem:[%s4510_s4 + $0x38] sm:$0xff]   ;;  %v3555_v7 = vld [vmem:[%s4510_s4 + $0x20] sm:$0xff]  }
   0x7   :  { %v71_v13 = vrot.slane %v70_v11, 2  ;;  %3223 = vmatpush3.bf16.msra.mxu1 %v3542_v9  ;;  %v187_v9 = vlaneseq }
   0x8   :  { %v36_v12 = vrot.slane %v35_v10, 2  ;;  %3224 = vmatprep.subr.bf16.mxu1 %v3720_v0 }
   0x9   :  { %v72_v16 = vadd.f32 %v71_v13, %v70_v11 }
   0xa   :  { %v37_v15 = vadd.f32 %v36_v12, %v35_v10  ;;  %v3871_v10 = vshrl.u32 %v187_v9, 7  ;;  %v3879_v12 = vld [vmem:[%s4511_s5] sm:$0xf] }
   0xb   :  { %v73_v19 = vrot.slane %v72_v16, 1  ;;  %3225 = vmatpush3.bf16.msra.mxu1 %v3543_v14 }
   0xc   :  { %v38_v18 = vrot.slane %v37_v15, 1  ;;  %3226 = vmatprep.subr.bf16.mxu1 %v3720_v0  ;;  %v3874_v11 = vsub.s32 0, %v3871_v10 }
   0xd   :  { %v74_v21 = vadd.f32 %v73_v19, %v72_v16 }
   0xe   :  { %v39_v20 = vadd.f32 %v38_v18, %v37_v15  ;;  %v190_v13 = vrot.slane %v3879_v12, %v3874_v11 }
   0xf   :  { %v75_v24 = vmul.f32 0.125, %v74_v21  ;;  %3227 = vmatpush3.bf16.msra.mxu1 %v3544_v17 }
  0x10   :  { %v41_v23 = vmul.f32 0.125, %v39_v20  ;;  %3228 = vmatprep.subr.bf16.mxu1 %v3720_v0 }
  0x11   :  { %v76_v26 = vsub.f32 %v3790_v3, %v75_v24  ;;  %v3550_v24 = vld [vmem:[%s4510_s4 + $0x78] sm:$0xff]  }
  0x12   :  { %v42_v25 = vsub.f32 %v3785_v2, %v41_v23 }
  0x13   :  { %v77_v28 = vmul.f32 %v76_v26, %v76_v26  ;;  %3229 = vmatpush3.bf16.msra.mxu1 %v3545_v22 }
  0x14   :  { %v43_v27 = vmul.f32 %v42_v25, %v42_v25  ;;  %3230 = vmatprep.subr.bf16.mxu1 %v3720_v0 }
  0x15   :  { %v78_v30 = vsel %vm32_vm0, %v77_v28, 0.0  ;;  %v3556_v28 = vld [vmem:[%s4510_s4 + $0x60] sm:$0xff]  }
  0x16   :  { %v44_v29 = vsel %vm32_vm0, %v43_v27, 0.0  ;;  %v79_v32 = vrot.slane %v78_v30, 4  ;;  %v3554_v27 = vld [vmem:[%s4510_s4 + $0x68] sm:$0xff]  }
  0x17   :  { %v45_v31 = vrot.slane %v44_v29, 4  ;;  %3231 = vmatpush3.bf16.msra.mxu1 %v3546_v62 }
  0x18   :  { %v80_v34 = vadd.f32 %v79_v32, %v78_v30  ;;  %3232 = vmatprep.subr.bf16.mxu1 %v3720_v0  ;;  %v3559_v30 = vld [vmem:[%s4510_s4 + $0x10] sm:$0xff]   ;;  %v3561_v32 = vld [vmem:[%s4510_s4 + $0x8] sm:$0xff]  }
  0x19   :  { %v46_v33 = vadd.f32 %v45_v31, %v44_v29  ;;  %v3558_v29 = vld [vmem:[%s4510_s4 + $0x58] sm:$0xff]   ;;  %v3560_v31 = vld [vmem:[%s4510_s4 + $0x50] sm:$0xff]  }
  0x1a   :  { %v81_v36 = vrot.slane %v80_v34, 2 }
  0x1b   :  { %v47_v35 = vrot.slane %v46_v33, 2  ;;  %3233 = vmatpush3.bf16.msra.mxu1 %v3547_v63 }
  0x1c   :  { %v82_v38 = vadd.f32 %v81_v36, %v80_v34  ;;  %3234 = vmatprep.subr.bf16.mxu1 %v3720_v0  ;;  %v3563_v34 = vld [vmem:[%s4510_s4] sm:$0xff]   ;;  %v3930_v36 = vsub.s32 1, %v3871_v10 }
  0x1d   :  { %v48_v37 = vadd.f32 %v47_v35, %v46_v33  ;;  %v3562_v33 = vld [vmem:[%s4510_s4 + $0x48] sm:$0xff]   ;;  %v3564_v35 = vld [vmem:[%s4510_s4 + $0x40] sm:$0xff]  }
  0x1e   :  { %v83_v40 = vrot.slane %v82_v38, 1 }
  0x1f   :  { %v49_v39 = vrot.slane %v48_v37, 1  ;;  %3235 = vmatpush3.bf16.msra.mxu1 %v3548_v1 }
  0x20   :  { %v84_v42 = vadd.f32 %v83_v40, %v82_v38  ;;  %3260 = vmatprep.subr.bf16.mxu1 %v3720_v0 }
  0x21   :  { %v50_v41 = vadd.f32 %v49_v39, %v48_v37  ;;  %v265_v37 = vrot.slane %v3879_v12, %v3930_v36 }
  0x22   :  { %v85_v44 = vmul.f32 0.14285715, %v84_v42 }
  0x23   :  { %v51_v43 = vmul.f32 0.14285715, %v50_v41 }
  0x24   :  { %vm88_vm4 = vcmp.eq.f32.partialorder %v85_v44, inf  ;;  %v91_v49 = vand.u32 2147483648, %v85_v44  ;;  %vm90_vm5 = vcmp.eq.f32.partialorder %v85_v44, 0.0 }
  0x25   :  { %3640 = vrsqrt.f32 %v51_v43  ;;  %vm54_vm2 = vcmp.eq.f32.partialorder %v51_v43, inf  ;;  %v57_v46 = vand.u32 2147483648, %v51_v43  ;;  %vm56_vm3 = vcmp.eq.f32.partialorder %v51_v43, 0.0 }
  0x26   :  { %3642 = vrsqrt.f32 %v85_v44 }
  0x32   :  { %v3641_v45 = vpop.eup %3640 }
  0x33   :  { %v3643_v47 = vpop.eup %3642  ;;  %v53_v48 = vmul.f32 %v3641_v45, %v51_v43 }
  0x34   :  { %v87_v50 = vmul.f32 %v3643_v47, %v85_v44 }
  0x35   :  { %v55_v51 = vsel %vm54_vm2, %v51_v43, %v53_v48 }
  0x36   :  { %v58_v52 = vsel %vm56_vm3, %v57_v46, %v55_v51  ;;  %v89_v53 = vsel %vm88_vm4, %v85_v44, %v87_v50  ;;  %v3942_v50 = vsub.s32 3, %v3871_v10 }
  0x37   :  { %v3824_v54 = vadd.f32 1e-06, %v58_v52  ;;  %v92_v55 = vsel %vm90_vm5, %v91_v49, %v89_v53  ;;  %v3939_v49 = vsub.s32 2, %v3871_v10  ;;  %vm2671_vm5 = vcmask 261120  }
  0x38   :  { %v3826_v56 = vadd.f32 1e-06, %v92_v55  ;;  %v491_v52 = vrot.slane %v3879_v12, %v3942_v50 }
  0x39   :  { %3644 = vrcp.f32 %v3824_v54  ;;  %v379_v51 = vrot.slane %v3879_v12, %v3939_v49 }
  0x3a   :  { %3646 = vrcp.f32 %v3826_v56 }
  0x46   :  { %v3645_v57 = vpop.eup %3644 }
  0x47   :  { %v3647_v58 = vpop.eup %3646  ;;  %v3830_v59 = vmul.f32 %v3645_v57, %v42_v25 }
  0x48   :  { %v3832_v60 = vmul.f32 %v3647_v58, %v76_v26  ;;  %v3552_v26 = vld [vmem:[%s4510_s4 + $0x70] sm:$0xff]  }
  0x4a   :  { %v186_v61 = vpack.c.bf16 %v3832_v60, %v3830_v59 }
  0x4c   :  { %3217 = vmatmul.mubr.msk.bf16.vlgmr.msra.gmra.mxu0 %vm32_vm0, %v186_v61 }
  0x4d   :  { %3256 = vmatprep.mubr.msk.bf16.mxu0 %vm3721_vm1, %v3720_v0  ;;  %3241 = vmatpush3.bf16.msra.mxu0 %v3549_v4 }
  0x4e   :  { %3242 = vmatprep.subr.bf16.mxu0 %v3720_v0 }
  0x51   :  { %3243 = vmatpush3.bf16.msra.mxu0 %v3551_v5 }
  0x52   :  { %3244 = vmatprep.subr.bf16.mxu0 %v3720_v0 }
  0x55   :  { %3245 = vmatpush3.bf16.msra.mxu0 %v3553_v6 }
  0x56   :  { %3246 = vmatprep.subr.bf16.mxu0 %v3720_v0 }
  0x59   :  { %3247 = vmatpush3.bf16.msra.mxu0 %v3555_v7 }
  0x5a   :  { %3248 = vmatprep.subr.bf16.mxu0 %v3720_v0 }
  0x5d   :  { %3249 = vmatpush3.bf16.msra.mxu0 %v3557_v8 }
  0x5e   :  { %3250 = vmatprep.subr.bf16.mxu0 %v3720_v0 }
  0x61   :  { %3251 = vmatpush3.bf16.msra.mxu0 %v3559_v30 }
  0x62   :  { %3252 = vmatprep.subr.bf16.mxu0 %v3720_v0 }
  0x65   :  { %3253 = vmatpush3.bf16.msra.mxu0 %v3561_v32 }
  0x66   :  { %3254 = vmatprep.subr.bf16.mxu0 %v3720_v0 }
  0x69   :  { %3255 = vmatpush3.bf16.msra.mxu0 %v3563_v34 }
  0x6a   :  { %3280 = vmatprep.subr.bf16.mxu0 %v3720_v0 }
 0x10c   :  { %v234_v14 = vpop.f32.mrf.mxu0 }
 0x10d   :  { %v235_v15 = vadd.f32 %v234_v14, %v190_v13 }
 0x10e   :  { %v3218_v16 = vpop.f32.mrf.mxu0 }
 0x10f   :  { %v241_v18 = vmul.f32 0.01, %v235_v15  ;;  %v141_v16 = vsel %vm102_vm6, %v3790_v3, 0.0 }
 0x110   :  { %v237_v17 = vpop.f32.mrf.mxu0 }
 0x111   :  { %v238_v19 = vadd.f32 %v237_v17, %v190_v13  ;;  %v243_v22 = vmax.f32 %v235_v15, %v241_v18  ;;  %v103_v13 = vsel %vm102_vm6, %v3785_v2, 0.0  ;;  %v142_v18 = vrot.slane %v141_v16, 4 }
 0x112   :  { %v3219_v20 = vpop.f32.mrf.mxu0  ;;  %v104_v14 = vrot.slane %v103_v13, 4 }
 0x113   :  { %v242_v21 = vmul.f32 0.01, %v238_v19  ;;  %v3565_v20 = vld [vmem:[%s4507_s2 + $0x8] sm:$0xff]  }
 0x114   :  { %v105_v17 = vadd.f32 %v104_v14, %v103_v13 }
 0x115   :  { %v244_v23 = vmax.f32 %v238_v19, %v242_v21 }
 0x116   :  { %v106_v21 = vrot.slane %v105_v17, 2 }
 0x117   :  { %v261_v25 = vpack.c.bf16 %v244_v23, %v243_v22  ;;  %v143_v22 = vadd.f32 %v142_v18, %v141_v16 }
 0x118   :  { %v107_v23 = vadd.f32 %v106_v21, %v105_v17 }
 0x119   :  { %3237 = vmatmul.mubr.bf16.vlgmr.msra.gmra.mxu1 %v261_v25 }
 0x11a   :  { %3261 = vmatpush3.bf16.msra.mxu1 %v3550_v24  ;;  %3276 = vmatprep.mubr.msk.bf16.mxu1 %vm3721_vm1, %v3720_v0  ;;  %v144_v24 = vrot.slane %v143_v22, 2  ;;  %v108_v25 = vrot.slane %v107_v23, 1 }
 0x11b   :  { %3262 = vmatprep.subr.bf16.mxu1 %v3720_v0 }
 0x11e   :  { %3263 = vmatpush3.bf16.msra.mxu1 %v3552_v26  ;;  %v145_v26 = vadd.f32 %v144_v24, %v143_v22 }
 0x11f   :  { %3264 = vmatprep.subr.bf16.mxu1 %v3720_v0 }
 0x122   :  { %3265 = vmatpush3.bf16.msra.mxu1 %v3554_v27  ;;  %v109_v27 = vadd.f32 %v108_v25, %v107_v23 }
 0x123   :  { %3266 = vmatprep.subr.bf16.mxu1 %v3720_v0 }
 0x126   :  { %3267 = vmatpush3.bf16.msra.mxu1 %v3556_v28  ;;  %v146_v28 = vrot.slane %v145_v26, 1 }
 0x127   :  { %3268 = vmatprep.subr.bf16.mxu1 %v3720_v0 }
 0x128   :  { %v147_v30 = vadd.f32 %v146_v28, %v145_v26 }
 0x12a   :  { %3269 = vmatpush3.bf16.msra.mxu1 %v3558_v29  ;;  %v110_v29 = vmul.f32 0.125, %v109_v27  ;;  %v148_v32 = vmul.f32 0.125, %v147_v30 }
 0x12b   :  { %3270 = vmatprep.subr.bf16.mxu1 %v3720_v0 }
 0x12c   :  { %v149_v34 = vsub.f32 %v3790_v3, %v148_v32 }
 0x12e   :  { %3271 = vmatpush3.bf16.msra.mxu1 %v3560_v31  ;;  %v111_v31 = vsub.f32 %v3785_v2, %v110_v29 }
 0x12f   :  { %3272 = vmatprep.subr.bf16.mxu1 %v3720_v0 }
 0x132   :  { %3273 = vmatpush3.bf16.msra.mxu1 %v3562_v33  ;;  %v112_v33 = vmul.f32 %v111_v31, %v111_v31 }
 0x133   :  { %3274 = vmatprep.subr.bf16.mxu1 %v3720_v0 }
 0x136   :  { %3275 = vmatpush3.bf16.msra.mxu1 %v3564_v35  ;;  %v113_v35 = vsel %vm102_vm6, %v112_v33, 0.0 }
 0x137   :  { %3306 = vmatprep.subr.bf16.mxu1 %v3720_v0 }
 0x1d9   :  { %v348_v38 = vpop.f32.mrf.mxu1 }
 0x1da   :  { %v349_v39 = vadd.f32 %v348_v38, %v265_v37  ;;  %v114_v38 = vrot.slane %v113_v35, 4 }
 0x1db   :  { %v3238_v40 = vpop.f32.mrf.mxu1 }
 0x1dc   :  { %v355_v42 = vmul.f32 0.01, %v349_v39  ;;  %v115_v40 = vadd.f32 %v114_v38, %v113_v35 }
 0x1dd   :  { %v351_v41 = vpop.f32.mrf.mxu1 }
 0x1de   :  { %v352_v43 = vadd.f32 %v351_v41, %v265_v37  ;;  %v357_v46 = vmax.f32 %v349_v39, %v355_v42  ;;  %v150_v37 = vmul.f32 %v149_v34, %v149_v34  ;;  %v116_v42 = vrot.slane %v115_v40, 2 }
 0x1df   :  { %v3239_v44 = vpop.f32.mrf.mxu1 }
 0x1e0   :  { %v356_v45 = vmul.f32 0.01, %v352_v43  ;;  %v151_v39 = vsel %vm102_vm6, %v150_v37, 0.0  ;;  %v117_v44 = vadd.f32 %v116_v42, %v115_v40  ;;  %v3566_v42 = vld [vmem:[%s4509_s3 + $0x78] sm:$0xff]   ;;  %vm2749_vm6 = vcmask 16384  }
 0x1e1   :  { %v152_v41 = vrot.slane %v151_v39, 4 }
 0x1e2   :  { %v358_v47 = vmax.f32 %v352_v43, %v356_v45 }
 0x1e3   :  { %v153_v43 = vadd.f32 %v152_v41, %v151_v39 }
 0x1e4   :  { %v359_v48 = vpack.c.bf16 %v358_v47, %v357_v46  ;;  %v118_v46 = vrot.slane %v117_v44, 1 }
 0x1e5   :  { %v154_v45 = vrot.slane %v153_v43, 2 }
 0x1e6   :  { %3257 = vmatmul.mubr.bf16.vlgmr.msra.gmra.mxu0 %v359_v48  ;;  %3277 = vmatmul.mubr.bf16.vlgmr.msra.gmra.mxu1 %v359_v48  ;;  %v119_v48 = vadd.f32 %v118_v46, %v117_v44  ;;  %v3570_v44 = vld [vmem:[%s4509_s3 + $0x58] sm:$0xff]   ;;  %v3572_v46 = vld [vmem:[%s4509_s3 + $0x48] sm:$0xff]  }
 0x1e7   :  { %3282 = vmatprep.mubr.msk.bf16.mxu0 %vm3721_vm1, %v3720_v0  ;;  %3322 = vmatprep.mubr.msk.bf16.mxu1 %vm3721_vm1, %v3720_v0  ;;  %v155_v47 = vadd.f32 %v154_v45, %v153_v43  ;;  %v3568_v43 = vld [vmem:[%s4509_s3 + $0x68] sm:$0xff]   ;;  %v3571_v45 = vld [vmem:[%s4509_s3 + $0x50] sm:$0xff]  }
 0x1e8   :  { %3281 = vmatpush3.bf16.msra.mxu0 %v3565_v20 }
 0x1e9   :  { %3286 = vmatprep.subr.bf16.mxu0 %v3720_v0  ;;  %v156_v2 = vrot.slane %v155_v47, 1 }
 0x2a6   :  { %v462_v53 = vpop.f32.mrf.mxu0  ;;  %v574_v55 = vpop.f32.mrf.mxu1 }
 0x2a7   :  { %v463_v57 = vadd.f32 %v462_v53, %v379_v51  ;;  %v575_v58 = vadd.f32 %v574_v55, %v491_v52 }
 0x2a8   :  { %v3258_v61 = vpop.f32.mrf.mxu0  ;;  %v3278_v62 = vpop.f32.mrf.mxu1 }
 0x2a9   :  { %3648 = vtanh.f32 %v463_v57  ;;  %597 = vrot.lane.b32.xlu1 %v575_v58, %s3722_s20 }
 0x2aa   :  { %v465_v63 = vpop.f32.mrf.mxu0  ;;  %v577_v1 = vpop.f32.mrf.mxu1 }
 0x2ab   :  { %v466_v4 = vadd.f32 %v465_v63, %v379_v51  ;;  %v578_v5 = vadd.f32 %v577_v1, %v491_v52  ;;  %v120_v51 = vmul.f32 0.14285715, %v119_v48  ;;  %v157_v52 = vadd.f32 %v156_v2, %v155_v47  ;;  %v3573_v47 = vld [vmem:[%s4509_s3 + $0x40] sm:$0xff]   ;;  %v3574_v48 = vld [vmem:[%s4510_s4 + $0xb8] sm:$0xff]   ;;  %v3576_v2 = vld [vmem:[%s4510_s4 + $0xb0] sm:$0xff]  }
 0x2ac   :  { %v3259_v6 = vpop.f32.mrf.mxu0  ;;  %v3279_v7 = vpop.f32.mrf.mxu1  ;;  %3307 = vmatpush3.bf16.msra.mxu1 %v3574_v48 }
 0x2ad   :  { %3650 = vtanh.f32 %v466_v4  ;;  %599 = vrot.lane.b32.xlu1 %v578_v5, %s3722_s20  ;;  %v158_v3 = vmul.f32 0.14285715, %v157_v52  ;;  %vm123_vm7 = vcmp.eq.f32.partialorder %v120_v51, inf  ;;  %v126_v58 = vand.u32 2147483648, %v120_v51  ;;  %3308 = vmatprep.subr.bf16.mxu1 %v3720_v0  ;;  %v3580_v52 = vld [vmem:[%s4510_s4 + $0xa0] sm:$0xff]  }
 0x2ae   :  { %vm125_vm8 = vcmp.eq.f32.partialorder %v120_v51, 0.0 }
 0x2af   :  { %vm161_vm9 = vcmp.eq.f32.partialorder %v158_v3, inf  ;;  %v164_v1 = vand.u32 2147483648, %v158_v3  ;;  %vm163_vm10 = vcmp.eq.f32.partialorder %v158_v3, 0.0 }
 0x2b0   :  { %3309 = vmatpush3.bf16.msra.mxu1 %v3576_v2 }
 0x2b1   :  { %3310 = vmatprep.subr.bf16.mxu1 %v3720_v0 }
 0x2b6   :  { %v3950_v8 = vpop.eup %3648 }
 0x2b7   :  { %v581_v9 = vmul.f32 1.442695, %v3950_v8 }
 0x2b9   :  { %3652 = vpow2.f32 %v581_v9 }
 0x2ba   :  { %v3953_v10 = vpop.eup %3650 }
 0x2bb   :  { %v583_v12 = vmul.f32 1.442695, %v3953_v10  ;;  %v608_v41 = vsel %vm32_vm0, %v3953_v10, 0.0  ;;  %v3569_v10 = vld [vmem:[%s4509_s3 + $0x60] sm:$0xff]  }
 0x2bd   :  { %3654 = vpow2.f32 %v583_v12 }
 0x2be   :  { %3656 = vrsqrt.f32 %v120_v51 }
 0x2bf   :  { %3658 = vrsqrt.f32 %v158_v3 }
 0x2c6   :  { %v3653_v15 = vpop.eup %3652 }
 0x2c7   :  { %587 = vrot.lane.b32.xlu0 %v3653_v15, %s3722_s20 }
 0x2ca   :  { %v3655_v19 = vpop.eup %3654 }
 0x2cb   :  { %589 = vrot.lane.b32.xlu0 %v3655_v19, %s3722_s20  ;;  %v3657_v53 = vpop.eup %3656 }
 0x2cc   :  { %v122_v55 = vmul.f32 %v3657_v53, %v120_v51  ;;  %v3659_v57 = vpop.eup %3658  ;;  %v4042_v53 = vld [vmem:[%s4511_s5 + $0x4] sm:$0xf] }
 0x2cd   :  { %v160_v62 = vmul.f32 %v3659_v57, %v158_v3 }
 0x2ce   :  { %v124_v61 = vsel %vm123_vm7, %v120_v51, %v122_v55  ;;  %v3578_v51 = vld [vmem:[%s4510_s4 + $0xa8] sm:$0xff]   ;;  %v622_v55 = vrot.slane %v4042_v53, %v3874_v11 }
 0x2cf   :  { %v127_v63 = vsel %vm125_vm8, %v126_v58, %v124_v61  ;;  %v162_v4 = vsel %vm161_vm9, %v158_v3, %v160_v62  ;;  %3311 = vmatpush3.bf16.msra.mxu1 %v3578_v51  ;;  %v3582_v3 = vld [vmem:[%s4510_s4 + $0x98] sm:$0xff]  }
 0x2d0   :  { %v128_v5 = vadd.f32 1e-06, %v127_v63  ;;  %v165_v6 = vsel %vm163_vm10, %v164_v1, %v162_v4  ;;  %3312 = vmatprep.subr.bf16.mxu1 %v3720_v0 }
 0x2d1   :  { %v166_v7 = vadd.f32 1e-06, %v165_v6 }
 0x2d2   :  { %3660 = vrcp.f32 %v128_v5 }
 0x2d3   :  { %3662 = vrcp.f32 %v166_v7  ;;  %3313 = vmatpush3.bf16.msra.mxu1 %v3580_v52 }
 0x2d4   :  { %3664 = vlog2.f32 %v128_v5  ;;  %3314 = vmatprep.subr.bf16.mxu1 %v3720_v0 }
 0x2d5   :  { %3666 = vlog2.f32 %v166_v7 }
 0x2d6   :  { %3668 = vlog2.f32 %v3824_v54  ;;  %v605_v54 = vsel %vm32_vm0, %v3950_v8, 0.0  ;;  %v3567_v8 = vld [vmem:[%s4509_s3 + $0x70] sm:$0xff]  }
 0x2d7   :  { %3670 = vlog2.f32 %v3826_v56  ;;  %3315 = vmatpush3.bf16.msra.mxu1 %v3582_v3 }
 0x2d8   :  { %3316 = vmatprep.subr.bf16.mxu1 %v3720_v0 }
 0x2df   :  { %v3661_v9 = vpop.eup %3660 }
 0x2e0   :  { %v130_v12 = vmul.f32 %v3661_v9, %v111_v31  ;;  %v3663_v13 = vpop.eup %3662  ;;  %v3575_v9 = vld [vmem:[%s4510_s4 + $0xf8] sm:$0xff]  }
 0x2e1   :  { %v168_v17 = vmul.f32 %v3663_v13, %v149_v34  ;;  %v3665_v18 = vpop.eup %3664  ;;  %v3577_v13 = vld [vmem:[%s4510_s4 + $0xf0] sm:$0xff]  }
 0x2e2   :  { %v132_v22 = vmul.f32 0.6931472, %v3665_v18  ;;  %v3667_v26 = vpop.eup %3666  ;;  %v3585_v18 = vld [vmem:[%s4510_s4 + $0xd0] sm:$0xff]  }
 0x2e3   :  { %v170_v27 = vmul.f32 0.6931472, %v3667_v26  ;;  %v3669_v28 = vpop.eup %3668 }
 0x2e4   :  { %v63_v29 = vmul.f32 0.6931472, %v3669_v28  ;;  %v3671_v30 = vpop.eup %3670 }
 0x2e5   :  { %v97_v32 = vmul.f32 0.6931472, %v3671_v30 }
 0x2e6   :  { %v64_v31 = vsel %vm32_vm0, %v63_v29, 0.0 }
 0x2e7   :  { %v98_v33 = vsel %vm32_vm0, %v97_v32, 0.0 }
 0x31b   :  { %v598_v14 = vpop.permute.xlu1 %597 }
 0x31f   :  { %v600_v23 = vpop.permute.xlu1 %599 }
 0x339   :  { %v588_v15 = vpop.permute.xlu0 %587 }
 0x33a   :  { %v593_v16 = vmul.f32 %v588_v15, %v130_v12  ;;  %v3581_v15 = vld [vmem:[%s4510_s4 + $0xe0] sm:$0xff]  }
 0x33c   :  { %v603_v19 = vadd.f32 %v598_v14, %v593_v16  ;;  %v3579_v14 = vld [vmem:[%s4510_s4 + $0xe8] sm:$0xff]   ;;  %v3583_v16 = vld [vmem:[%s4510_s4 + $0xd8] sm:$0xff]  }
 0x33d   :  { %v590_v20 = vpop.permute.xlu0 %589 }
 0x33e   :  { %v594_v21 = vmul.f32 %v590_v20, %v168_v17  ;;  %1122 = vrot.lane.b32.xlu1 %v603_v19, %s3723_s23  ;;  %v3584_v17 = vld [vmem:[%s4510_s4 + $0x90] sm:$0xff]   ;;  %v3587_v20 = vld [vmem:[%s4510_s4 + $0xc8] sm:$0xff]  }
 0x33f   :  { %3317 = vmatpush3.bf16.msra.mxu1 %v3584_v17 }
 0x340   :  { %v604_v24 = vadd.f32 %v600_v23, %v594_v21  ;;  %3318 = vmatprep.subr.bf16.mxu1 %v3720_v0  ;;  %v3588_v21 = vld [vmem:[%s4510_s4 + $0x80] sm:$0xff]   ;;  %v2889_v23 = vld [vmem:[%s4512_s6 + $0x18] sm:$0xff] }
 0x342   :  { %134 = vrot.lane.b32.xlu1 %v132_v22, %s3723_s23  ;;  %v618_v25 = vpack.c.bf16 %v604_v24, %v603_v19  ;;  %v3586_v19 = vld [vmem:[%s4510_s4 + $0x88] sm:$0xff]   ;;  %v3589_v22 = vld [vmem:[%s4510_s4 + $0xc0] sm:$0xff]  }
 0x343   :  { %3319 = vmatpush3.bf16.msra.mxu1 %v3586_v19 }
 0x344   :  { %624 = vrot.lane.b32.xlu0 %v618_v25, %s3723_s23  ;;  %3320 = vmatprep.subr.bf16.mxu1 %v3720_v0 }
 0x347   :  { %3321 = vmatpush3.bf16.msra.mxu1 %v3588_v21 }
 0x348   :  { %1124 = vrot.lane.b32.xlu0 %v604_v24, %s3723_s23  ;;  %v701_v24 = vrot.slane %v4042_v53, %v3930_v36 }
 0x34c   :  { %172 = vrot.lane.b32.xlu0 %v170_v27, %s3723_s23 }
 0x366   :  { %65 = vadd.xlane.f32.xlu1 %v64_v31 }
 0x36b   :  { %99 = vadd.xlane.f32.xlu0 %v98_v33 }
 0x3b0   :  { %v3974_v34 = vpop.permute.xlu1 %1122 }
 0x3b4   :  { %v135_v35 = vpop.permute.xlu1 %134 }
 0x3b5   :  { %v137_v37 = vsel %vm32_vm0, %v135_v35, 0.0 }
 0x3b6   :  { %138 = vadd.xlane.f32.xlu0 %v137_v37  ;;  %v625_v38 = vpop.permute.xlu0 %624 }
 0x3b7   :  { %3283 = vmatmul.mubr.msk.bf16.vlgmr.msra.gmra.mxu0 %vm32_vm0, %v625_v38  ;;  %v2888_v38 = vld [vmem:[%s4512_s6 + $0x10] sm:$0xff] }
 0x3b8   :  { %3302 = vmatprep.mubr.msk.bf16.mxu0 %vm3721_vm1, %v3720_v0  ;;  %3287 = vmatpush3.bf16.msra.mxu0 %v3566_v42 }
 0x3b9   :  { %3288 = vmatprep.subr.bf16.mxu0 %v3720_v0 }
 0x3ba   :  { %606 = vadd.xlane.f32.xlu0 %v605_v54  ;;  %v3982_v56 = vpop.permute.xlu0 %1124  ;;  %v2883_v54 = vld [vmem:[%s4512_s6 + $0x28] sm:$0xff] }
 0x3bb   :  { %3346 = vmatprep.subr.mxu1 %v2883_v54 }
 0x3bc   :  { %3289 = vmatpush3.bf16.msra.mxu0 %v3567_v8 }
 0x3bd   :  { %3290 = vmatprep.subr.bf16.mxu0 %v3720_v0 }
 0x3be   :  { %v173_v39 = vpop.permute.xlu0 %172 }
 0x3bf   :  { %v175_v40 = vsel %vm32_vm0, %v173_v39, 0.0  ;;  %v2882_v39 = vld [vmem:[%s4512_s6 + $0x20] sm:$0xff] }
 0x3c0   :  { %176 = vadd.xlane.f32.xlu1 %v175_v40  ;;  %3291 = vmatpush3.bf16.msra.mxu0 %v3568_v43  ;;  %v1035_v40 = vld [vmem:[%s4512_s6 + $0x8] sm:$0xff] }
 0x3c1   :  { %3292 = vmatprep.subr.bf16.mxu0 %v3720_v0 }
 0x3c4   :  { %609 = vadd.xlane.f32.xlu1 %v608_v41  ;;  %3293 = vmatpush3.bf16.msra.mxu0 %v3569_v10  ;;  %v816_v41 = vrot.slane %v4042_v53, %v3939_v49 }
 0x3c5   :  { %3294 = vmatprep.subr.bf16.mxu0 %v3720_v0 }
 0x3c8   :  { %3295 = vmatpush3.bf16.msra.mxu0 %v3570_v44 }
 0x3c9   :  { %3296 = vmatprep.subr.bf16.mxu0 %v3720_v0 }
 0x3cc   :  { %3297 = vmatpush3.bf16.msra.mxu0 %v3571_v45 }
 0x3cd   :  { %3298 = vmatprep.subr.bf16.mxu0 %v3720_v0 }
 0x3d0   :  { %3299 = vmatpush3.bf16.msra.mxu0 %v3572_v46 }
 0x3d1   :  { %3300 = vmatprep.subr.bf16.mxu0 %v3720_v0 }
 0x3d4   :  { %3301 = vmatpush3.bf16.msra.mxu0 %v3573_v47 }
 0x3d5   :  { %3326 = vmatprep.subr.bf16.mxu0 %v3720_v0 }
 0x477   :  { %v669_v57 = vpop.f32.mrf.mxu0 }
 0x478   :  { %v670_v58 = vadd.f32 %v669_v57, %v622_v55 }
 0x479   :  { %v3284_v61 = vpop.f32.mrf.mxu0 }
 0x47a   :  { %v676_v63 = vmul.f32 0.01, %v670_v58  ;;  %v928_v61 = vrot.slane %v4042_v53, %v3942_v50 }
 0x47b   :  { %v672_v62 = vpop.f32.mrf.mxu0 }
 0x47c   :  { %v673_v1 = vadd.f32 %v672_v62, %v622_v55  ;;  %v678_v6 = vmax.f32 %v670_v58, %v676_v63 }
 0x47d   :  { %v3285_v4 = vpop.f32.mrf.mxu0 }
 0x47e   :  { %v677_v5 = vmul.f32 0.01, %v673_v1 }
 0x480   :  { %v679_v7 = vmax.f32 %v673_v1, %v677_v5 }
 0x482   :  { %v697_v12 = vpack.c.bf16 %v679_v7, %v678_v6 }
 0x484   :  { %3303 = vmatmul.mubr.bf16.vlgmr.msra.gmra.mxu0 %v697_v12  ;;  %v1034_v12 = vld [vmem:[%s4512_s6] sm:$0xff] }
 0x485   :  { %3327 = vmatpush3.bf16.msra.mxu0 %v3575_v9  ;;  %3342 = vmatprep.mubr.msk.bf16.mxu0 %vm3721_vm1, %v3720_v0 }
 0x486   :  { %3328 = vmatprep.subr.bf16.mxu0 %v3720_v0 }
 0x489   :  { %3329 = vmatpush3.bf16.msra.mxu0 %v3577_v13 }
 0x48a   :  { %3330 = vmatprep.subr.bf16.mxu0 %v3720_v0 }
 0x48d   :  { %3331 = vmatpush3.bf16.msra.mxu0 %v3579_v14 }
 0x48e   :  { %3332 = vmatprep.subr.bf16.mxu0 %v3720_v0 }
 0x491   :  { %3333 = vmatpush3.bf16.msra.mxu0 %v3581_v15 }
 0x492   :  { %3334 = vmatprep.subr.bf16.mxu0 %v3720_v0 }
 0x495   :  { %3335 = vmatpush3.bf16.msra.mxu0 %v3583_v16 }
 0x496   :  { %3336 = vmatprep.subr.bf16.mxu0 %v3720_v0 }
 0x499   :  { %3337 = vmatpush3.bf16.msra.mxu0 %v3585_v18 }
 0x49a   :  { %3338 = vmatprep.subr.bf16.mxu0 %v3720_v0 }
 0x49d   :  { %3339 = vmatpush3.bf16.msra.mxu0 %v3587_v20 }
 0x49e   :  { %3340 = vmatprep.subr.bf16.mxu0 %v3720_v0 }
 0x4a1   :  { %3341 = vmatpush3.bf16.msra.mxu0 %v3589_v22 }
 0x4a2   :  { %3367 = vmatprep.subr.mxu0 %v2889_v23 }
 0x544   :  { %v784_v25 = vpop.f32.mrf.mxu0 }
 0x545   :  { %v785_v26 = vadd.f32 %v784_v25, %v701_v24 }
 0x546   :  { %v3304_v27 = vpop.f32.mrf.mxu0 }
 0x547   :  { %v791_v29 = vmul.f32 0.01, %v785_v26 }
 0x548   :  { %v787_v28 = vpop.f32.mrf.mxu0 }
 0x549   :  { %v788_v30 = vadd.f32 %v787_v28, %v701_v24  ;;  %v793_v33 = vmax.f32 %v785_v26, %v791_v29 }
 0x54a   :  { %v3305_v31 = vpop.f32.mrf.mxu0 }
 0x54b   :  { %v792_v32 = vmul.f32 0.01, %v788_v30 }
 0x54d   :  { %v794_v35 = vmax.f32 %v788_v30, %v792_v32 }
 0x54f   :  { %v795_v37 = vpack.c.bf16 %v794_v35, %v793_v33 }
 0x551   :  { %3323 = vmatmul.mubr.bf16.vlgmr.msra.gmra.mxu1 %v795_v37  ;;  %3343 = vmatmul.mubr.bf16.vlgmr.msra.gmra.mxu0 %v795_v37 }
 0x552   :  { %3371 = vmatprep.mubr.msk.f32.mxu0 %vm32_vm0, %v3974_v34  ;;  %3368 = vmatpush3.msra.mxu0 %v2889_v23 }
 0x553   :  { %3369 = vmatprep.subr.mxu0 %v2888_v38  ;;  %3347 = vmatpush3.msra.mxu1 %v2883_v54 }
 0x554   :  { %3370 = vmatpush3.msra.mxu0 %v2888_v38  ;;  %3348 = vmatprep.subr.mxu1 %v2882_v39 }
 0x555   :  { %3380 = vmatprep.subr.bf16.mxu0 %v3720_v0  ;;  %3349 = vmatpush3.msra.mxu1 %v2882_v39 }
 0x556   :  { %3353 = vmatprep.subr.mxu1 %v1035_v40 }
 0x559   :  { %3372 = vmatmul.mubr.msk.f32.vlgmr.msra.gmra.mxu0 %vm32_vm0, %v3982_v56 }
 0x55a   :  { %3396 = vmatprep.mubr.msk.bf16.mxu0 %vm3721_vm1, %v3720_v0 }
 0x611   :  { %v899_v42 = vpop.f32.mrf.mxu1  ;;  %v1011_v8 = vpop.f32.mrf.mxu0 }
 0x612   :  { %v900_v43 = vadd.f32 %v899_v42, %v816_v41  ;;  %v1012_v63 = vadd.f32 %v1011_v8, %v928_v61 }
 0x613   :  { %v3324_v10 = vpop.f32.mrf.mxu1  ;;  %v3344_v44 = vpop.f32.mrf.mxu0 }
 0x614   :  { %3672 = vtanh.f32 %v900_v43 }
 0x615   :  { %v902_v45 = vpop.f32.mrf.mxu1  ;;  %v1014_v46 = vpop.f32.mrf.mxu0 }
 0x616   :  { %v903_v47 = vadd.f32 %v902_v45, %v816_v41  ;;  %v1015_v6 = vadd.f32 %v1014_v46, %v928_v61 }
 0x617   :  { %v3325_v48 = vpop.f32.mrf.mxu1  ;;  %v3345_v2 = vpop.f32.mrf.mxu0 }
 0x618   :  { %3674 = vtanh.f32 %v903_v47 }
 0x619   :  { %v3373_v15 = vpop.f32.mrf.mxu0 }
 0x61b   :  { %v1352_v23 = vpop.f32.mrf.mxu0 }
 0x621   :  { %v3673_v51 = vpop.eup %3672 }
 0x622   :  { %v1018_v52 = vmul.f32 1.442695, %v3673_v51  ;;  %v1026_v3 = vsel %vm32_vm0, %v3673_v51, 0.0 }
 0x623   :  { %1027 = vadd.xlane.f32.xlu0 %v1026_v3 }
 0x624   :  { %3676 = vpow2.f32 %v1018_v52 }
 0x625   :  { %v3675_v55 = vpop.eup %3674 }
 0x626   :  { %v1020_v57 = vmul.f32 1.442695, %v3675_v55  ;;  %v1029_v58 = vsel %vm32_vm0, %v3675_v55, 0.0 }
 0x627   :  { %1030 = vadd.xlane.f32.xlu1 %v1029_v58 }
 0x628   :  { %3678 = vpow2.f32 %v1020_v57 }
 0x631   :  { %v3677_v62 = vpop.eup %3676 }
 0x632   :  { %v1022_v1 = vmul.f32 %v3677_v62, %v3830_v59  ;;  %v2891_v59 = vld [vmem:[%s4512_s6 + $0x38] sm:$0xff] }
 0x634   :  { %v1024_v4 = vadd.f32 %v1022_v1, %v1012_v63 }
 0x635   :  { %v3679_v5 = vpop.eup %3678 }
 0x636   :  { %v1023_v7 = vmul.f32 %v3679_v5, %v3832_v60  ;;  %3350 = vmatprep.mubr.msk.f32.mxu1 %vm32_vm0, %v1024_v4  ;;  %v2890_v60 = vld [vmem:[%s4512_s6 + $0x30] sm:$0xff] }
 0x638   :  { %v1025_v9 = vadd.f32 %v1023_v7, %v1015_v6 }
 0x63a   :  { %3351 = vmatmul.mubr.msk.f32.vlgmr.msra.gmra.mxu1 %vm32_vm0, %v1025_v9 }
 0x63b   :  { %3354 = vmatpush3.msra.mxu1 %v1035_v40  ;;  %3357 = vmatprep.mubr.msk.f32.mxu1 %vm32_vm0, %v3974_v34  ;;  %v3590_v34 = vld [vmem:[%s4507_s2 + $0x10] sm:$0xff]  }
 0x63c   :  { %3355 = vmatprep.subr.mxu1 %v1034_v12 }
 0x63d   :  { %3356 = vmatpush3.msra.mxu1 %v1034_v12 }
 0x63e   :  { %3358 = vmatmul.mubr.msk.f32.vlgmr.msra.gmra.mxu1 %vm32_vm0, %v3982_v56  ;;  %3360 = vmatprep.subr.mxu1 %v2891_v59 }
 0x63f   :  { %3361 = vmatpush3.msra.mxu1 %v2891_v59  ;;  %3364 = vmatprep.mubr.msk.f32.mxu1 %vm32_vm0, %v1024_v4 }
 0x640   :  { %3362 = vmatprep.subr.mxu1 %v2890_v60 }
 0x641   :  { %3363 = vmatpush3.msra.mxu1 %v2890_v60 }
 0x642   :  { %3365 = vmatmul.mubr.msk.f32.vlgmr.msra.gmra.mxu1 %vm32_vm0, %v1025_v9  ;;  %3374 = vmatprep.subr.bf16.mxu1 %v3720_v0 }
 0x643   :  { %3376 = vmatprep.mubr.msk.bf16.mxu1 %vm3721_vm1, %v3720_v0  ;;  %3375 = vmatpush3.bf16.msra.mxu1 %v3590_v34 }
 0x644   :  { %3400 = vmatprep.subr.bf16.mxu1 %v3720_v0 }
 0x6fa   :  { %v3352_v56 = vpop.f32.mrf.mxu1 }
 0x6fc   :  { %v1111_v53 = vpop.f32.mrf.mxu1 }
 0x6fe   :  { %v3359_v13 = vpop.f32.mrf.mxu1 }
 0x6ff   :  { %v1202_v14 = vadd.f32 %v3359_v13, %v3352_v56 }
 0x700   :  { %v1196_v16 = vpop.f32.mrf.mxu1 }
 0x701   :  { %v1395_v17 = vsel %vm32_vm0, %v1202_v14, 0.0  ;;  %v1197_v18 = vadd.f32 %v1196_v16, %v1111_v53 }
 0x702   :  { %v1396_v19 = vrot.slane %v1395_v17, 4  ;;  %v3366_v20 = vpop.f32.mrf.mxu1 }
 0x703   :  { %v1361_v21 = vsel %vm32_vm0, %v1197_v18, 0.0  ;;  %v1358_v22 = vadd.f32 %v3373_v15, %v3366_v20 }
 0x704   :  { %v1397_v24 = vadd.f32 %v1396_v19, %v1395_v17  ;;  %v1362_v25 = vrot.slane %v1361_v21, 4  ;;  %v1277_v26 = vpop.f32.mrf.mxu1 }
 0x705   :  { %v1463_v27 = vsel %vm32_vm0, %v1358_v22, 0.0  ;;  %v1353_v28 = vadd.f32 %v1352_v23, %v1277_v26 }
 0x706   :  { %v1398_v29 = vrot.slane %v1397_v24, 2  ;;  %v1363_v30 = vadd.f32 %v1362_v25, %v1361_v21  ;;  %v1464_v31 = vrot.slane %v1463_v27, 4 }
 0x707   :  { %v1429_v32 = vsel %vm32_vm0, %v1353_v28, 0.0 }
 0x708   :  { %v1399_v33 = vadd.f32 %v1398_v29, %v1397_v24  ;;  %v1364_v35 = vrot.slane %v1363_v30, 2  ;;  %v1465_v37 = vadd.f32 %v1464_v31, %v1463_v27  ;;  %v1430_v38 = vrot.slane %v1429_v32, 4 }
 0x70a   :  { %v1400_v54 = vrot.slane %v1399_v33, 1  ;;  %v1365_v39 = vadd.f32 %v1364_v35, %v1363_v30  ;;  %v1466_v40 = vrot.slane %v1465_v37, 2  ;;  %v1431_v41 = vadd.f32 %v1430_v38, %v1429_v32 }
 0x70c   :  { %v1401_v42 = vadd.f32 %v1400_v54, %v1399_v33  ;;  %v1366_v8 = vrot.slane %v1365_v39, 1  ;;  %v1467_v43 = vadd.f32 %v1466_v40, %v1465_v37  ;;  %v1432_v10 = vrot.slane %v1431_v41, 2 }
 0x70e   :  { %v1402_v44 = vmul.f32 0.125, %v1401_v42  ;;  %v1367_v45 = vadd.f32 %v1366_v8, %v1365_v39  ;;  %v1468_v46 = vrot.slane %v1467_v43, 1  ;;  %v1433_v47 = vadd.f32 %v1432_v10, %v1431_v41 }
 0x710   :  { %v4150_v48 = vsub.f32 %v1202_v14, %v1402_v44  ;;  %v1368_v2 = vmul.f32 0.125, %v1367_v45  ;;  %v1469_v51 = vadd.f32 %v1468_v46, %v1467_v43  ;;  %v1434_v52 = vrot.slane %v1433_v47, 1 }
 0x712   :  { %v1404_v3 = vmul.f32 %v4150_v48, %v4150_v48  ;;  %v4154_v55 = vsub.f32 %v1197_v18, %v1368_v2  ;;  %v1470_v57 = vmul.f32 0.125, %v1469_v51  ;;  %v1435_v58 = vadd.f32 %v1434_v52, %v1433_v47 }
 0x714   :  { %v1405_v61 = vsel %vm32_vm0, %v1404_v3, 0.0  ;;  %v1370_v62 = vmul.f32 %v4154_v55, %v4154_v55  ;;  %v4159_v63 = vsub.f32 %v1358_v22, %v1470_v57  ;;  %v1436_v1 = vmul.f32 0.125, %v1435_v58 }
 0x715   :  { %v1406_v4 = vrot.slane %v1405_v61, 4 }
 0x716   :  { %v1371_v5 = vsel %vm32_vm0, %v1370_v62, 0.0  ;;  %v1472_v6 = vmul.f32 %v4159_v63, %v4159_v63  ;;  %v4164_v7 = vsub.f32 %v1353_v28, %v1436_v1 }
 0x717   :  { %v1407_v9 = vadd.f32 %v1406_v4, %v1405_v61  ;;  %v1372_v12 = vrot.slane %v1371_v5, 4 }
 0x718   :  { %v1473_v59 = vsel %vm32_vm0, %v1472_v6, 0.0  ;;  %v1438_v60 = vmul.f32 %v4164_v7, %v4164_v7 }
 0x719   :  { %v1408_v34 = vrot.slane %v1407_v9, 2  ;;  %v1373_v56 = vadd.f32 %v1372_v12, %v1371_v5  ;;  %v1474_v53 = vrot.slane %v1473_v59, 4 }
 0x71a   :  { %v1439_v13 = vsel %vm32_vm0, %v1438_v60, 0.0 }
 0x71b   :  { %v1409_v14 = vadd.f32 %v1408_v34, %v1407_v9  ;;  %v1374_v15 = vrot.slane %v1373_v56, 2  ;;  %v1475_v16 = vadd.f32 %v1474_v53, %v1473_v59  ;;  %v1440_v17 = vrot.slane %v1439_v13, 4 }
 0x71d   :  { %v1410_v18 = vrot.slane %v1409_v14, 1  ;;  %v1375_v19 = vadd.f32 %v1374_v15, %v1373_v56  ;;  %v1476_v20 = vrot.slane %v1475_v16, 2  ;;  %v1441_v21 = vadd.f32 %v1440_v17, %v1439_v13 }
 0x71f   :  { %v1411_v22 = vadd.f32 %v1410_v18, %v1409_v14  ;;  %v1376_v23 = vrot.slane %v1375_v19, 1  ;;  %v1477_v24 = vadd.f32 %v1476_v20, %v1475_v16  ;;  %v1442_v25 = vrot.slane %v1441_v21, 2 }
 0x721   :  { %v1412_v26 = vmul.f32 0.14285715, %v1411_v22  ;;  %v1377_v27 = vadd.f32 %v1376_v23, %v1375_v19  ;;  %v1478_v28 = vrot.slane %v1477_v24, 1  ;;  %v1443_v29 = vadd.f32 %v1442_v25, %v1441_v21  ;;  %v3591_v23 = vld [vmem:[%s4509_s3 + $0xb8] sm:$0xff]   ;;  %v3594_v25 = vld [vmem:[%s4509_s3 + $0xa0] sm:$0xff]  }
 0x722   :  { %3381 = vmatpush3.bf16.msra.mxu0 %v3591_v23 }
 0x723   :  { %3680 = vrsqrt.f32 %v1412_v26  ;;  %v1378_v30 = vmul.f32 0.14285715, %v1377_v27  ;;  %v1479_v31 = vadd.f32 %v1478_v28, %v1477_v24  ;;  %v1444_v32 = vrot.slane %v1443_v29, 1  ;;  %v3592_v24 = vld [vmem:[%s4509_s3 + $0xb0] sm:$0xff]   ;;  %3382 = vmatprep.subr.bf16.mxu0 %v3720_v0  ;;  %v3597_v28 = vld [vmem:[%s4509_s3 + $0x88] sm:$0xff]  }
 0x724   :  { %vm1415_vm11 = vcmp.eq.f32.partialorder %v1412_v26, inf  ;;  %v1418_v39 = vand.u32 2147483648, %v1412_v26  ;;  %vm1417_vm12 = vcmp.eq.f32.partialorder %v1412_v26, 0.0  ;;  %v3596_v27 = vld [vmem:[%s4509_s3 + $0x90] sm:$0xff]  }
 0x725   :  { %3682 = vrsqrt.f32 %v1378_v30  ;;  %v1480_v33 = vmul.f32 0.14285715, %v1479_v31  ;;  %v1445_v35 = vadd.f32 %v1444_v32, %v1443_v29  ;;  %vm1381_vm13 = vcmp.eq.f32.partialorder %v1378_v30, inf  ;;  %v3598_v29 = vld [vmem:[%s4509_s3 + $0x80] sm:$0xff]   ;;  %v3601_v31 = vld [vmem:[%s4510_s4 + $0x130] sm:$0xff]   ;;  %v3603_v32 = vld [vmem:[%s4510_s4 + $0x128] sm:$0xff]  }
 0x726   :  { %v1384_v10 = vand.u32 2147483648, %v1378_v30  ;;  %vm1383_vm14 = vcmp.eq.f32.partialorder %v1378_v30, 0.0  ;;  %3383 = vmatpush3.bf16.msra.mxu0 %v3592_v24 }
 0x727   :  { %3684 = vrsqrt.f32 %v1480_v33  ;;  %v1446_v37 = vmul.f32 0.14285715, %v1445_v35  ;;  %vm1483_vm15 = vcmp.eq.f32.partialorder %v1480_v33, inf  ;;  %v1486_v51 = vand.u32 2147483648, %v1480_v33  ;;  %3384 = vmatprep.subr.bf16.mxu0 %v3720_v0  ;;  %v3607_v35 = vld [vmem:[%s4510_s4 + $0x118] sm:$0xff]  }
 0x728   :  { %vm1485_vm2 = vcmp.eq.f32.partialorder %v1480_v33, 0.0 }
 0x729   :  { %3686 = vrsqrt.f32 %v1446_v37  ;;  %vm1449_vm3 = vcmp.eq.f32.partialorder %v1446_v37, inf  ;;  %v1452_v62 = vand.u32 2147483648, %v1446_v37  ;;  %vm1451_vm4 = vcmp.eq.f32.partialorder %v1446_v37, 0.0 }
 0x730   :  { %v3681_v38 = vpop.eup %3680 }
 0x731   :  { %v1414_v54 = vmul.f32 %v3681_v38, %v1412_v26 }
 0x732   :  { %v3683_v40 = vpop.eup %3682 }
 0x733   :  { %v1416_v41 = vsel %vm1415_vm11, %v1412_v26, %v1414_v54  ;;  %v1380_v8 = vmul.f32 %v3683_v40, %v1378_v30  ;;  %v3595_v26 = vld [vmem:[%s4509_s3 + $0x98] sm:$0xff]  }
 0x734   :  { %v1419_v42 = vsel %vm1417_vm12, %v1418_v39, %v1416_v41  ;;  %v3685_v44 = vpop.eup %3684 }
 0x735   :  { %v1420_v43 = vadd.f32 1e-06, %v1419_v42  ;;  %v1382_v45 = vsel %vm1381_vm13, %v1378_v30, %v1380_v8  ;;  %v1482_v47 = vmul.f32 %v3685_v44, %v1480_v33  ;;  %v3599_v30 = vld [vmem:[%s4510_s4 + $0x138] sm:$0xff]  }
 0x736   :  { %v1385_v46 = vsel %vm1383_vm14, %v1384_v10, %v1382_v45  ;;  %v3687_v52 = vpop.eup %3686 }
 0x737   :  { %3688 = vrcp.f32 %v1420_v43  ;;  %v1386_v2 = vadd.f32 1e-06, %v1385_v46  ;;  %v1484_v3 = vsel %vm1483_vm15, %v1480_v33, %v1482_v47  ;;  %v1448_v58 = vmul.f32 %v3687_v52, %v1446_v37  ;;  %v3605_v33 = vld [vmem:[%s4510_s4 + $0x120] sm:$0xff]   ;;  %v3600_v46 = vld [vmem:[%s4510_s4 + $0x178] sm:$0xff]  }
 0x738   :  { %3690 = vlog2.f32 %v1420_v43  ;;  %v1487_v57 = vsel %vm1485_vm2, %v1486_v51, %v1484_v3  ;;  %v3604_v51 = vld [vmem:[%s4510_s4 + $0x168] sm:$0xff]   ;;  %v3606_v52 = vld [vmem:[%s4510_s4 + $0x160] sm:$0xff]   ;;  %v3608_v3 = vld [vmem:[%s4510_s4 + $0x158] sm:$0xff]  }
 0x739   :  { %3692 = vrcp.f32 %v1386_v2  ;;  %v1488_v61 = vadd.f32 1e-06, %v1487_v57  ;;  %v1450_v1 = vsel %vm1449_vm3, %v1446_v37, %v1448_v58  ;;  %v4246_v37 = vld [vmem:[%s4511_s5 + $0x8] sm:$0xf]  ;;  %v3609_v57 = vld [vmem:[%s4510_s4 + $0x110] sm:$0xff]  }
 0x73a   :  { %3694 = vlog2.f32 %v1386_v2  ;;  %v1453_v4 = vsel %vm1451_vm4, %v1452_v62, %v1450_v1  ;;  %v1510_v38 = vrot.slane %v4246_v37, %v3874_v11  ;;  %v3602_v2 = vld [vmem:[%s4510_s4 + $0x170] sm:$0xff]   ;;  %v3612_v62 = vld [vmem:[%s4510_s4 + $0x148] sm:$0xff]   ;;  %v3613_v1 = vld [vmem:[%s4510_s4 + $0x100] sm:$0xff]  }
 0x73b   :  { %3696 = vrcp.f32 %v1488_v61  ;;  %v1454_v5 = vadd.f32 1e-06, %v1453_v4  ;;  %v3610_v58 = vld [vmem:[%s4510_s4 + $0x150] sm:$0xff]   ;;  %v3614_v4 = vld [vmem:[%s4510_s4 + $0x140] sm:$0xff]  }
 0x73c   :  { %3698 = vlog2.f32 %v1488_v61  ;;  %v3611_v61 = vld [vmem:[%s4510_s4 + $0x108] sm:$0xff]  }
 0x73d   :  { %3700 = vrcp.f32 %v1454_v5 }
 0x73e   :  { %3702 = vlog2.f32 %v1454_v5  ;;  %v1586_v5 = vrot.slane %v4246_v37, %v3930_v36 }
 0x744   :  { %v3689_v6 = vpop.eup %3688 }
 0x745   :  { %v3691_v9 = vpop.eup %3690  ;;  %v4171_v34 = vmul.f32 %v3689_v6, %v4150_v48 }
 0x746   :  { %v1424_v12 = vmul.f32 0.6931472, %v3691_v9  ;;  %v3693_v59 = vpop.eup %3692 }
 0x747   :  { %v3695_v60 = vpop.eup %3694  ;;  %v4174_v56 = vmul.f32 %v3693_v59, %v4154_v55 }
 0x748   :  { %v1425_v53 = vsel %vm32_vm0, %v1424_v12, 0.0  ;;  %v1390_v13 = vmul.f32 0.6931472, %v3695_v60  ;;  %v3697_v14 = vpop.eup %3696 }
 0x749   :  { %1426 = vadd.xlane.f32.xlu1 %v1425_v53  ;;  %v1506_v15 = vpack.c.bf16 %v4171_v34, %v4174_v56  ;;  %v3699_v16 = vpop.eup %3698  ;;  %v4180_v17 = vmul.f32 %v3697_v14, %v4159_v63 }
 0x74a   :  { %v1391_v18 = vsel %vm32_vm0, %v1390_v13, 0.0  ;;  %v1492_v48 = vmul.f32 0.6931472, %v3699_v16  ;;  %v3701_v55 = vpop.eup %3700 }
 0x74b   :  { %1392 = vadd.xlane.f32.xlu0 %v1391_v18  ;;  %3377 = vmatmul.mubr.msk.bf16.vlgmr.msra.gmra.mxu1 %vm32_vm0, %v1506_v15  ;;  %v3703_v19 = vpop.eup %3702  ;;  %v4187_v20 = vmul.f32 %v3701_v55, %v4164_v7  ;;  %v3593_v7 = vld [vmem:[%s4509_s3 + $0xa8] sm:$0xff]   ;;  %v1701_v55 = vrot.slane %v4246_v37, %v3939_v49 }
 0x74c   :  { %3416 = vmatprep.mubr.msk.bf16.mxu1 %vm3721_vm1, %v3720_v0  ;;  %v1493_v21 = vsel %vm32_vm0, %v1492_v48, 0.0  ;;  %v1458_v22 = vmul.f32 0.6931472, %v3703_v19  ;;  %3385 = vmatpush3.bf16.msra.mxu0 %v3593_v7  ;;  %v3615_v48 = vld [vmem:[%s4507_s2 + $0x18] sm:$0xff]   ;;  %s3724_s2 = smov 1  }
 0x74d   :  { %1494 = vadd.xlane.f32.xlu1 %v1493_v21  ;;  %3386 = vmatprep.subr.bf16.mxu0 %v3720_v0 }
 0x74e   :  { %v1459_v63 = vsel %vm32_vm0, %v1458_v22, 0.0  ;;  %3401 = vmatpush3.bf16.msra.mxu1 %v3599_v30 }
 0x74f   :  { %1460 = vadd.xlane.f32.xlu0 %v1459_v63  ;;  %3402 = vmatprep.subr.bf16.mxu1 %v3720_v0 }
 0x750   :  { %3387 = vmatpush3.bf16.msra.mxu0 %v3594_v25 }
 0x751   :  { %3388 = vmatprep.subr.bf16.mxu0 %v3720_v0 }
 0x752   :  { %3403 = vmatpush3.bf16.msra.mxu1 %v3601_v31 }
 0x753   :  { %3404 = vmatprep.subr.bf16.mxu1 %v3720_v0 }
 0x754   :  { %3389 = vmatpush3.bf16.msra.mxu0 %v3595_v26 }
 0x755   :  { %3390 = vmatprep.subr.bf16.mxu0 %v3720_v0 }
 0x756   :  { %3405 = vmatpush3.bf16.msra.mxu1 %v3603_v32 }
 0x757   :  { %3406 = vmatprep.subr.bf16.mxu1 %v3720_v0 }
 0x758   :  { %3391 = vmatpush3.bf16.msra.mxu0 %v3596_v27 }
 0x759   :  { %3392 = vmatprep.subr.bf16.mxu0 %v3720_v0 }
 0x75a   :  { %3407 = vmatpush3.bf16.msra.mxu1 %v3605_v33 }
 0x75b   :  { %3408 = vmatprep.subr.bf16.mxu1 %v3720_v0 }
 0x75c   :  { %3393 = vmatpush3.bf16.msra.mxu0 %v3597_v28 }
 0x75d   :  { %3394 = vmatprep.subr.bf16.mxu0 %v3720_v0 }
 0x75e   :  { %3409 = vmatpush3.bf16.msra.mxu1 %v3607_v35 }
 0x75f   :  { %3410 = vmatprep.subr.bf16.mxu1 %v3720_v0 }
 0x760   :  { %3395 = vmatpush3.bf16.msra.mxu0 %v3598_v29 }
 0x761   :  { %3420 = vmatprep.subr.bf16.mxu0 %v3720_v0 }
 0x762   :  { %3411 = vmatpush3.bf16.msra.mxu1 %v3609_v57  ;;  %v3630_v57 = vld [vmem:[%s4510_s4 + $0x1a0] sm:$0xff]  }
 0x763   :  { %3412 = vmatprep.subr.bf16.mxu1 %v3720_v0 }
 0x766   :  { %3413 = vmatpush3.bf16.msra.mxu1 %v3611_v61  ;;  %v4378_v61 = vld [vmem:[%s4511_s5 + $0xc] sm:$0xf] }
 0x767   :  { %3414 = vmatprep.subr.bf16.mxu1 %v3720_v0 }
 0x76a   :  { %3415 = vmatpush3.bf16.msra.mxu1 %v3613_v1 }
 0x76b   :  { %3440 = vmatprep.subr.bf16.mxu1 %v3720_v0 }
 0x80b   :  { %v1554_v54 = vpop.f32.mrf.mxu1 }
 0x80c   :  { %v1555_v39 = vadd.f32 %v1554_v54, %v1510_v38 }
 0x80d   :  { %v3378_v40 = vpop.f32.mrf.mxu1 }
 0x80e   :  { %v1561_v42 = vmul.f32 0.01, %v1555_v39 }
 0x80f   :  { %v1557_v41 = vpop.f32.mrf.mxu1 }
 0x810   :  { %v1558_v8 = vadd.f32 %v1557_v41, %v1510_v38  ;;  %v1563_v44 = vmax.f32 %v1555_v39, %v1561_v42  ;;  %v1813_v38 = vrot.slane %v4246_v37, %v3942_v50  ;;  %v3619_v37 = vld [vmem:[%s4509_s3 + $0xe0] sm:$0xff]  }
 0x811   :  { %v3379_v43 = vpop.f32.mrf.mxu1 }
 0x812   :  { %v1562_v10 = vmul.f32 0.01, %v1558_v8 }
 0x814   :  { %v1564_v45 = vmax.f32 %v1558_v8, %v1562_v10  ;;  %v3616_v10 = vld [vmem:[%s4509_s3 + $0xf8] sm:$0xff]  }
 0x816   :  { %v1582_v47 = vpack.c.bf16 %v1564_v45, %v1563_v44  ;;  %v3620_v45 = vld [vmem:[%s4509_s3 + $0xd8] sm:$0xff]  }
 0x818   :  { %3397 = vmatmul.mubr.bf16.vlgmr.msra.gmra.mxu0 %v1582_v47  ;;  %v3622_v47 = vld [vmem:[%s4509_s3 + $0xc8] sm:$0xff]  }
 0x819   :  { %3421 = vmatpush3.bf16.msra.mxu0 %v3600_v46  ;;  %3436 = vmatprep.mubr.msk.bf16.mxu0 %vm3721_vm1, %v3720_v0  ;;  %v3621_v46 = vld [vmem:[%s4509_s3 + $0xd0] sm:$0xff]  }
 0x81a   :  { %3422 = vmatprep.subr.bf16.mxu0 %v3720_v0 }
 0x81d   :  { %3423 = vmatpush3.bf16.msra.mxu0 %v3602_v2  ;;  %v3623_v2 = vld [vmem:[%s4509_s3 + $0xc0] sm:$0xff]  }
 0x81e   :  { %3424 = vmatprep.subr.bf16.mxu0 %v3720_v0 }
 0x821   :  { %3425 = vmatpush3.bf16.msra.mxu0 %v3604_v51  ;;  %v3624_v51 = vld [vmem:[%s4510_s4 + $0x1b8] sm:$0xff]  }
 0x822   :  { %3426 = vmatprep.subr.bf16.mxu0 %v3720_v0 }
 0x825   :  { %3427 = vmatpush3.bf16.msra.mxu0 %v3606_v52  ;;  %v3626_v52 = vld [vmem:[%s4510_s4 + $0x1b0] sm:$0xff]  }
 0x826   :  { %3428 = vmatprep.subr.bf16.mxu0 %v3720_v0 }
 0x829   :  { %3429 = vmatpush3.bf16.msra.mxu0 %v3608_v3  ;;  %v3628_v3 = vld [vmem:[%s4510_s4 + $0x1a8] sm:$0xff]  }
 0x82a   :  { %3430 = vmatprep.subr.bf16.mxu0 %v3720_v0 }
 0x82d   :  { %3431 = vmatpush3.bf16.msra.mxu0 %v3610_v58  ;;  %v3632_v58 = vld [vmem:[%s4510_s4 + $0x198] sm:$0xff]  }
 0x82e   :  { %3432 = vmatprep.subr.bf16.mxu0 %v3720_v0 }
 0x831   :  { %3433 = vmatpush3.bf16.msra.mxu0 %v3612_v62  ;;  %v1928_v62 = vrot.slane %v4378_v61, %v3874_v11 }
 0x832   :  { %3434 = vmatprep.subr.bf16.mxu0 %v3720_v0 }
 0x835   :  { %3435 = vmatpush3.bf16.msra.mxu0 %v3614_v4 }
 0x836   :  { %3466 = vmatprep.subr.bf16.mxu0 %v3720_v0 }
 0x8d8   :  { %v1669_v6 = vpop.f32.mrf.mxu0 }
 0x8d9   :  { %v1670_v9 = vadd.f32 %v1669_v6, %v1586_v5 }
 0x8da   :  { %v3398_v12 = vpop.f32.mrf.mxu0 }
 0x8db   :  { %v1676_v60 = vmul.f32 0.01, %v1670_v9 }
 0x8dc   :  { %v1672_v59 = vpop.f32.mrf.mxu0 }
 0x8dd   :  { %v1673_v53 = vadd.f32 %v1672_v59, %v1586_v5  ;;  %v1678_v15 = vmax.f32 %v1670_v9, %v1676_v60 }
 0x8de   :  { %v3399_v13 = vpop.f32.mrf.mxu0 }
 0x8df   :  { %v1677_v14 = vmul.f32 0.01, %v1673_v53 }
 0x8e1   :  { %v1679_v16 = vmax.f32 %v1673_v53, %v1677_v14  ;;  %v3625_v14 = vld [vmem:[%s4510_s4 + $0x1f8] sm:$0xff]  }
 0x8e3   :  { %v1680_v18 = vpack.c.bf16 %v1679_v16, %v1678_v15  ;;  %v3627_v16 = vld [vmem:[%s4510_s4 + $0x1f0] sm:$0xff]  }
 0x8e5   :  { %3417 = vmatmul.mubr.bf16.vlgmr.msra.gmra.mxu1 %v1680_v18  ;;  %3437 = vmatmul.mubr.bf16.vlgmr.msra.gmra.mxu0 %v1680_v18  ;;  %v3629_v18 = vld [vmem:[%s4510_s4 + $0x1e8] sm:$0xff]  }
 0x8e6   :  { %3442 = vmatprep.mubr.msk.bf16.mxu1 %vm3721_vm1, %v3720_v0  ;;  %3482 = vmatprep.mubr.msk.bf16.mxu0 %vm3721_vm1, %v3720_v0 }
 0x8e7   :  { %3441 = vmatpush3.bf16.msra.mxu1 %v3615_v48  ;;  %3467 = vmatpush3.bf16.msra.mxu0 %v3624_v51  ;;  %v3631_v48 = vld [vmem:[%s4510_s4 + $0x1e0] sm:$0xff]  }
 0x8e8   :  { %3446 = vmatprep.subr.bf16.mxu1 %v3720_v0  ;;  %3468 = vmatprep.subr.bf16.mxu0 %v3720_v0 }
 0x8eb   :  { %3469 = vmatpush3.bf16.msra.mxu0 %v3626_v52 }
 0x8ec   :  { %3470 = vmatprep.subr.bf16.mxu0 %v3720_v0 }
 0x8ef   :  { %3471 = vmatpush3.bf16.msra.mxu0 %v3628_v3 }
 0x8f0   :  { %3472 = vmatprep.subr.bf16.mxu0 %v3720_v0 }
 0x8f3   :  { %3473 = vmatpush3.bf16.msra.mxu0 %v3630_v57 }
 0x8f4   :  { %3474 = vmatprep.subr.bf16.mxu0 %v3720_v0 }
 0x8f7   :  { %3475 = vmatpush3.bf16.msra.mxu0 %v3632_v58 }
 0x8f8   :  { %3476 = vmatprep.subr.bf16.mxu0 %v3720_v0 }
 0x9a5   :  { %v1784_v19 = vpop.f32.mrf.mxu1  ;;  %v1896_v21 = vpop.f32.mrf.mxu0 }
 0x9a6   :  { %v1785_v22 = vadd.f32 %v1784_v19, %v1701_v55  ;;  %v1897_v40 = vadd.f32 %v1896_v21, %v1813_v38  ;;  %v3634_v19 = vld [vmem:[%s4510_s4 + $0x190] sm:$0xff]  }
 0x9a7   :  { %v3418_v63 = vpop.f32.mrf.mxu1  ;;  %v3438_v23 = vpop.f32.mrf.mxu0  ;;  %v3635_v21 = vld [vmem:[%s4510_s4 + $0x1d0] sm:$0xff]   ;;  %3477 = vmatpush3.bf16.msra.mxu0 %v3634_v19 }
 0x9a8   :  { %3704 = vtanh.f32 %v1785_v22  ;;  %3478 = vmatprep.subr.bf16.mxu0 %v3720_v0  ;;  %v3636_v22 = vld [vmem:[%s4510_s4 + $0x188] sm:$0xff]   ;;  %v3638_v23 = vld [vmem:[%s4510_s4 + $0x180] sm:$0xff]  }
 0x9a9   :  { %v1787_v24 = vpop.f32.mrf.mxu1  ;;  %v1899_v7 = vpop.f32.mrf.mxu0  ;;  %v3637_v63 = vld [vmem:[%s4510_s4 + $0x1c8] sm:$0xff]  }
 0x9aa   :  { %v1788_v25 = vadd.f32 %v1787_v24, %v1701_v55  ;;  %v1900_v41 = vadd.f32 %v1899_v7, %v1813_v38  ;;  %v3633_v55 = vld [vmem:[%s4510_s4 + $0x1d8] sm:$0xff]   ;;  %v3639_v24 = vld [vmem:[%s4510_s4 + $0x1c0] sm:$0xff]  }
 0x9ab   :  { %v3419_v26 = vpop.f32.mrf.mxu1  ;;  %v3439_v27 = vpop.f32.mrf.mxu0  ;;  %3479 = vmatpush3.bf16.msra.mxu0 %v3636_v22  ;;  %v3059_v7 = vld [vmem:[%s4512_s6 + $0x58] sm:$0xff] }
 0x9ac   :  { %3706 = vtanh.f32 %v1788_v25  ;;  %3480 = vmatprep.subr.bf16.mxu0 %v3720_v0  ;;  %v2004_v25 = vrot.slane %v4378_v61, %v3930_v36 }
 0x9af   :  { %3481 = vmatpush3.bf16.msra.mxu0 %v3638_v23 }
 0x9b5   :  { %v3705_v28 = vpop.eup %3704 }
 0x9b6   :  { %v1903_v29 = vmul.f32 1.442695, %v3705_v28  ;;  %v1911_v30 = vsel %vm32_vm0, %v3705_v28, 0.0 }
 0x9b7   :  { %1912 = vadd.xlane.f32.xlu0 %v1911_v30 }
 0x9b8   :  { %3708 = vpow2.f32 %v1903_v29 }
 0x9b9   :  { %v3707_v31 = vpop.eup %3706 }
 0x9ba   :  { %v1905_v32 = vmul.f32 1.442695, %v3707_v31  ;;  %v1914_v33 = vsel %vm32_vm0, %v3707_v31, 0.0 }
 0x9bb   :  { %1915 = vadd.xlane.f32.xlu1 %v1914_v33 }
 0x9bc   :  { %3710 = vpow2.f32 %v1905_v32 }
 0x9c5   :  { %v3709_v35 = vpop.eup %3708 }
 0x9c6   :  { %v1907_v54 = vmul.f32 %v3709_v35, %v4187_v20  ;;  %v3617_v20 = vld [vmem:[%s4509_s3 + $0xf0] sm:$0xff]  }
 0x9c8   :  { %v4314_v8 = vadd.f32 %v1907_v54, %v1897_v40  ;;  %v3058_v54 = vld [vmem:[%s4512_s6 + $0x50] sm:$0xff]  ;;  %v3052_v40 = vld [vmem:[%s4512_s6 + $0x60] sm:$0xff] }
 0x9c9   :  { %v3711_v39 = vpop.eup %3710 }
 0x9ca   :  { %v1908_v42 = vmul.f32 %v3711_v39, %v4180_v17  ;;  %v3618_v17 = vld [vmem:[%s4509_s3 + $0xe8] sm:$0xff]  }
 0x9cb   :  { %v3053_v39 = vld [vmem:[%s4512_s6 + $0x68] sm:$0xff] }
 0x9cc   :  { %v4316_v43 = vadd.f32 %v1908_v42, %v1900_v41  ;;  %3506 = vmatprep.subr.mxu0 %v3053_v39  ;;  %v3051_v41 = vld [vmem:[%s4512_s6 + $0x48] sm:$0xff]  ;;  %v2119_v42 = vrot.slane %v4378_v61, %v3939_v49 }
 0x9ce   :  { %v1924_v44 = vpack.c.bf16 %v4316_v43, %v4314_v8 }
 0x9d0   :  { %3443 = vmatmul.mubr.msk.bf16.vlgmr.msra.gmra.mxu1 %vm32_vm0, %v1924_v44 }
 0x9d1   :  { %3447 = vmatpush3.bf16.msra.mxu1 %v3616_v10  ;;  %3462 = vmatprep.mubr.msk.bf16.mxu1 %vm3721_vm1, %v3720_v0 }
 0x9d2   :  { %3448 = vmatprep.subr.bf16.mxu1 %v3720_v0 }
 0x9d5   :  { %3449 = vmatpush3.bf16.msra.mxu1 %v3617_v20 }
 0x9d6   :  { %3450 = vmatprep.subr.bf16.mxu1 %v3720_v0 }
 0x9d9   :  { %3451 = vmatpush3.bf16.msra.mxu1 %v3618_v17 }
 0x9da   :  { %3452 = vmatprep.subr.bf16.mxu1 %v3720_v0 }
 0x9dd   :  { %3453 = vmatpush3.bf16.msra.mxu1 %v3619_v37 }
 0x9de   :  { %3454 = vmatprep.subr.bf16.mxu1 %v3720_v0 }
 0x9e1   :  { %3455 = vmatpush3.bf16.msra.mxu1 %v3620_v45 }
 0x9e2   :  { %3456 = vmatprep.subr.bf16.mxu1 %v3720_v0 }
 0x9e5   :  { %3457 = vmatpush3.bf16.msra.mxu1 %v3621_v46 }
 0x9e6   :  { %3458 = vmatprep.subr.bf16.mxu1 %v3720_v0 }
 0x9e9   :  { %3459 = vmatpush3.bf16.msra.mxu1 %v3622_v47 }
 0x9ea   :  { %3460 = vmatprep.subr.bf16.mxu1 %v3720_v0 }
 0x9ed   :  { %3461 = vmatpush3.bf16.msra.mxu1 %v3623_v2 }
 0x9ee   :  { %3486 = vmatprep.subr.bf16.mxu1 %v3720_v0 }
 0xa90   :  { %v1972_v1 = vpop.f32.mrf.mxu1 }
 0xa91   :  { %v1973_v4 = vadd.f32 %v1972_v1, %v1928_v62 }
 0xa92   :  { %v3444_v5 = vpop.f32.mrf.mxu1 }
 0xa93   :  { %v1979_v9 = vmul.f32 0.01, %v1973_v4 }
 0xa94   :  { %v1975_v6 = vpop.f32.mrf.mxu1 }
 0xa95   :  { %v1976_v12 = vadd.f32 %v1975_v6, %v1928_v62  ;;  %v1981_v53 = vmax.f32 %v1973_v4, %v1979_v9  ;;  %v2231_v4 = vrot.slane %v4378_v61, %v3942_v50  ;;  %v66_v61 = vpop.xlane.xlu1 %65 }
 0xa96   :  { %v3445_v59 = vpop.f32.mrf.mxu1  ;;  %v67_v19 = vsub.f32 0.0, %v66_v61 }
 0xa97   :  { %v1980_v60 = vmul.f32 0.01, %v1976_v12 }
 0xa99   :  { %v1982_v13 = vmax.f32 %v1976_v12, %v1980_v60 }
 0xa9b   :  { %v2000_v15 = vpack.c.bf16 %v1982_v13, %v1981_v53 }
 0xa9d   :  { %3463 = vmatmul.mubr.bf16.vlgmr.msra.gmra.mxu1 %v2000_v15 }
 0xa9e   :  { %3487 = vmatpush3.bf16.msra.mxu1 %v3625_v14  ;;  %3502 = vmatprep.mubr.msk.bf16.mxu1 %vm3721_vm1, %v3720_v0  ;;  %v3050_v14 = vld [vmem:[%s4512_s6 + $0x40] sm:$0xff]  ;;  %vm2674_vm1 = vcmask 7168  }
 0xa9f   :  { %3488 = vmatprep.subr.bf16.mxu1 %v3720_v0 }
 0xaa2   :  { %3489 = vmatpush3.bf16.msra.mxu1 %v3627_v16  ;;  %v177_v16 = vpop.xlane.xlu1 %176 }
 0xaa3   :  { %3490 = vmatprep.subr.bf16.mxu1 %v3720_v0 }
 0xaa6   :  { %3491 = vmatpush3.bf16.msra.mxu1 %v3629_v18 }
 0xaa7   :  { %3492 = vmatprep.subr.bf16.mxu1 %v3720_v0 }
 0xaaa   :  { %3493 = vmatpush3.bf16.msra.mxu1 %v3631_v48  ;;  %v610_v48 = vpop.xlane.xlu1 %609 }
 0xaab   :  { %3494 = vmatprep.subr.bf16.mxu1 %v3720_v0 }
 0xaae   :  { %3495 = vmatpush3.bf16.msra.mxu1 %v3633_v55  ;;  %v1031_v22 = vpop.xlane.xlu1 %1030 }
 0xaaf   :  { %3496 = vmatprep.subr.bf16.mxu1 %v3720_v0 }
 0xab2   :  { %3497 = vmatpush3.bf16.msra.mxu1 %v3635_v21 }
 0xab3   :  { %3498 = vmatprep.subr.bf16.mxu1 %v3720_v0 }
 0xab6   :  { %3499 = vmatpush3.bf16.msra.mxu1 %v3637_v63 }
 0xab7   :  { %3500 = vmatprep.subr.bf16.mxu1 %v3720_v0 }
 0xaba   :  { %3501 = vmatpush3.bf16.msra.mxu1 %v3639_v24  ;;  %v178_v24 = vsub.f32 0.0, %v177_v16 }
 0xabb   :  { %3527 = vmatprep.subr.mxu1 %v3059_v7 }
 0xb5d   :  { %v2087_v26 = vpop.f32.mrf.mxu1 }
 0xb5e   :  { %v2088_v0 = vadd.f32 %v2087_v26, %v2004_v25 }
 0xb5f   :  { %v3464_v27 = vpop.f32.mrf.mxu1 }
 0xb60   :  { %v2094_v29 = vmul.f32 0.01, %v2088_v0 }
 0xb61   :  { %v2090_v28 = vpop.f32.mrf.mxu1 }
 0xb62   :  { %v2091_v30 = vadd.f32 %v2090_v28, %v2004_v25  ;;  %v2096_v33 = vmax.f32 %v2088_v0, %v2094_v29 }
 0xb63   :  { %v3465_v31 = vpop.f32.mrf.mxu1 }
 0xb64   :  { %v2095_v32 = vmul.f32 0.01, %v2091_v30 }
 0xb66   :  { %v2097_v35 = vmax.f32 %v2091_v30, %v2095_v32 }
 0xb68   :  { %v2098_v38 = vpack.c.bf16 %v2097_v35, %v2096_v33 }
 0xb6a   :  { %3483 = vmatmul.mubr.bf16.vlgmr.msra.gmra.mxu0 %v2098_v38  ;;  %3503 = vmatmul.mubr.bf16.vlgmr.msra.gmra.mxu1 %v2098_v38 }
 0xb6b   :  { %3531 = vmatprep.mubr.msk.f32.mxu1 %vm32_vm0, %v4314_v8  ;;  %3528 = vmatpush3.msra.mxu1 %v3059_v7  ;;  %v1427_v7 = vpop.xlane.xlu1 %1426 }
 0xb6c   :  { %3529 = vmatprep.subr.mxu1 %v3058_v54  ;;  %3507 = vmatpush3.msra.mxu0 %v3053_v39  ;;  %v1428_v32 = vsub.f32 0.0, %v1427_v7 }
 0xb6d   :  { %3530 = vmatpush3.msra.mxu1 %v3058_v54  ;;  %3508 = vmatprep.subr.mxu0 %v3052_v40 }
 0xb6e   :  { %3509 = vmatpush3.msra.mxu0 %v3052_v40 }
 0xb6f   :  { %3513 = vmatprep.subr.mxu0 %v3051_v41  ;;  %v1495_v30 = vpop.xlane.xlu1 %1494 }
 0xb70   :  { %v1496_v54 = vsub.f32 0.0, %v1495_v30 }
 0xb72   :  { %3532 = vmatmul.mubr.msk.f32.vlgmr.msra.gmra.mxu1 %vm32_vm0, %v4316_v43 }
 0xc2a   :  { %v2202_v10 = vpop.f32.mrf.mxu0  ;;  %v2314_v44 = vpop.f32.mrf.mxu1 }
 0xc2b   :  { %v2203_v20 = vadd.f32 %v2202_v10, %v2119_v42  ;;  %v2315_v6 = vadd.f32 %v2314_v44, %v2231_v4 }
 0xc2c   :  { %v3484_v17 = vpop.f32.mrf.mxu0  ;;  %v3504_v37 = vpop.f32.mrf.mxu1 }
 0xc2d   :  { %3712 = vtanh.f32 %v2203_v20 }
 0xc2e   :  { %v2205_v45 = vpop.f32.mrf.mxu0  ;;  %v2317_v46 = vpop.f32.mrf.mxu1 }
 0xc2f   :  { %v2206_v47 = vadd.f32 %v2205_v45, %v2119_v42  ;;  %v2318_v60 = vadd.f32 %v2317_v46, %v2231_v4  ;;  %v1916_v42 = vpop.xlane.xlu1 %1915 }
 0xc30   :  { %v3485_v2 = vpop.f32.mrf.mxu0  ;;  %v3505_v51 = vpop.f32.mrf.mxu1 }
 0xc31   :  { %3714 = vtanh.f32 %v2206_v47  ;;  %v2677_v2 = vld [vmem:[%s4514_s1] sm:$0xf] }
 0xc3a   :  { %v3713_v52 = vpop.eup %3712 }
 0xc3b   :  { %v2321_v3 = vmul.f32 1.442695, %v3713_v52  ;;  %v2329_v57 = vsel %vm32_vm0, %v3713_v52, 0.0  ;;  %v2700_v52 = vrot.slane %v2677_v2, %v3874_v11 }
 0xc3c   :  { %2330 = vadd.xlane.f32.xlu0 %v2329_v57 }
 0xc3d   :  { %3716 = vpow2.f32 %v2321_v3  ;;  %v3533_v3 = vpop.f32.mrf.mxu1 }
 0xc3e   :  { %v3715_v58 = vpop.eup %3714 }
 0xc3f   :  { %v2323_v62 = vmul.f32 1.442695, %v3715_v58  ;;  %v2332_v1 = vsel %vm32_vm0, %v3715_v58, 0.0 }
 0xc40   :  { %2333 = vadd.xlane.f32.xlu1 %v2332_v1 }
 0xc41   :  { %3718 = vpow2.f32 %v2323_v62 }
 0xc4a   :  { %v3717_v5 = vpop.eup %3716 }
 0xc4b   :  { %v2325_v9 = vmul.f32 %v3717_v5, %v4174_v56  ;;  %v3061_v56 = vld [vmem:[%s4512_s6 + $0x78] sm:$0xff]  ;;  %v2706_v5 = vrot.slane %v2677_v2, %v3930_v36  ;;  %v2722_v36 = vrot.slane %v2677_v2, %v3942_v50 }
 0xc4d   :  { %v2327_v12 = vadd.f32 %v2325_v9, %v2315_v6  ;;  %v2652_v9 = vpop.f32.mrf.mxu1 }
 0xc4e   :  { %v3719_v59 = vpop.eup %3718 }
 0xc4f   :  { %v2326_v53 = vmul.f32 %v3719_v59, %v4171_v34  ;;  %3510 = vmatprep.mubr.msk.f32.mxu0 %vm32_vm0, %v2327_v12  ;;  %v3060_v34 = vld [vmem:[%s4512_s6 + $0x70] sm:$0xff] }
 0xc51   :  { %v2328_v13 = vadd.f32 %v2326_v53, %v2318_v60 }
 0xc53   :  { %3511 = vmatmul.mubr.msk.f32.vlgmr.msra.gmra.mxu0 %vm32_vm0, %v2328_v13 }
 0xc54   :  { %3514 = vmatpush3.msra.mxu0 %v3051_v41  ;;  %3517 = vmatprep.mubr.msk.f32.mxu0 %vm32_vm0, %v4314_v8  ;;  %v100_v8 = vpop.xlane.xlu0 %99 }
 0xc55   :  { %3515 = vmatprep.subr.mxu0 %v3050_v14  ;;  %v101_v23 = vsub.f32 0.0, %v100_v8 }
 0xc56   :  { %3516 = vmatpush3.msra.mxu0 %v3050_v14 }
 0xc57   :  { %3520 = vmatprep.subr.mxu0 %v3061_v56  ;;  %3518 = vmatmul.mubr.msk.f32.vlgmr.msra.gmra.mxu0 %vm32_vm0, %v4316_v43  ;;  %v182_v0 = vadd.f32 %v178_v24, %v101_v23 }
 0xc58   :  { %3521 = vmatpush3.msra.mxu0 %v3061_v56  ;;  %3524 = vmatprep.mubr.msk.f32.mxu0 %vm32_vm0, %v2327_v12  ;;  %v139_v15 = vpop.xlane.xlu0 %138 }
 0xc59   :  { %3522 = vmatprep.subr.mxu0 %v3060_v34  ;;  %v140_v21 = vsub.f32 0.0, %v139_v15  ;;  %v612_v31 = vadd.f32 %v610_v48, %v182_v0 }
 0xc5a   :  { %3523 = vmatpush3.msra.mxu0 %v3060_v34 }
 0xc5b   :  { %3525 = vmatmul.mubr.msk.f32.vlgmr.msra.gmra.mxu0 %vm32_vm0, %v2328_v13  ;;  %v181_v43 = vadd.f32 %v140_v21, %v67_v19  ;;  %v1033_v38 = vadd.f32 %v1031_v22, %v612_v31  ;;  %v2713_v13 = vrot.slane %v2677_v2, %v3939_v49 }
 0xc5c   :  { %v607_v18 = vpop.xlane.xlu0 %606 }
 0xc5d   :  { %v611_v26 = vadd.f32 %v607_v18, %v181_v43  ;;  %v1498_v40 = vadd.f32 %v1428_v32, %v1033_v38 }
 0xc5f   :  { %v1500_v44 = vadd.f32 %v1498_v40, %v1496_v54 }
 0xc60   :  { %v1028_v55 = vpop.xlane.xlu0 %1027 }
 0xc61   :  { %v1032_v28 = vadd.f32 %v1028_v55, %v611_v26  ;;  %v1918_v17 = vadd.f32 %v1916_v42, %v1500_v44 }
 0xc64   :  { %v1393_v63 = vpop.xlane.xlu0 %1392 }
 0xc65   :  { %v1394_v27 = vsub.f32 0.0, %v1393_v63 }
 0xc67   :  { %v1497_v33 = vadd.f32 %v1394_v27, %v1032_v28 }
 0xc68   :  { %v1461_v25 = vpop.xlane.xlu0 %1460 }
 0xc69   :  { %v1462_v29 = vsub.f32 0.0, %v1461_v25 }
 0xc6b   :  { %v1499_v39 = vadd.f32 %v1497_v33, %v1462_v29 }
 0xc6c   :  { %v1913_v35 = vpop.xlane.xlu0 %1912 }
 0xc6d   :  { %v1917_v41 = vadd.f32 %v1913_v35, %v1499_v39 }
 0xcc5   :  { %v2331_v10 = vpop.xlane.xlu0 %2330 }
 0xcc6   :  { %v2335_v20 = vadd.f32 %v2331_v10, %v1917_v41 }
 0xcc8   :  { %2675 = vst.msk [vmem:[%s4513_s8] sm:$0xff] %vm2674_vm1, %v2335_v20 }
 0xcc9   :  { %v2334_v37 = vpop.xlane.xlu1 %2333 }
 0xcca   :  { %v2336_v45 = vadd.f32 %v2334_v37, %v1918_v17 }
 0xccc   :  { %2676 = vst.msk [vmem:[%s4513_s8 + $0x8] sm:$0xff] %vm2674_vm1, %v2336_v45 }
 0xd13   :  { %v3512_v46 = vpop.f32.mrf.mxu0 }
 0xd15   :  { %v2415_v47 = vpop.f32.mrf.mxu0 }
 0xd17   :  { %v3519_v51 = vpop.f32.mrf.mxu0 }
 0xd18   :  { %v2502_v1 = vadd.f32 %v3519_v51, %v3512_v46 }
 0xd19   :  { %v2496_v57 = vpop.f32.mrf.mxu0 }
 0xd1a   :  { %v2497_v58 = vadd.f32 %v2496_v57, %v2415_v47 }
 0xd1b   :  { %v3526_v62 = vpop.f32.mrf.mxu0 }
 0xd1c   :  { %v2701_v4 = vmul.f32 %v2700_v52, %v2497_v58  ;;  %v2678_v6 = vmul.f32 %v2497_v58, %v2497_v58  ;;  %v2658_v14 = vadd.f32 %v3533_v3, %v3526_v62 }
 0xd1d   :  { %v2577_v12 = vpop.f32.mrf.mxu0 }
 0xd1e   :  { %v2653_v59 = vadd.f32 %v2652_v9, %v2577_v12  ;;  %v2679_v60 = vsel %vm32_vm0, %v2678_v6, 0.0  ;;  %v2702_v53 = vsub.f32 %v2502_v1, %v2701_v4 }
 0xd1f   :  { %2680 = vadd.xlane.f32.xlu1 %v2679_v60 }
 0xd20   :  { %v2707_v11 = vmul.f32 %v2706_v5, %v2653_v59  ;;  %v2682_v56 = vmul.f32 %v2653_v59, %v2653_v59  ;;  %v2709_v34 = vmul.f32 %v2702_v53, %v2702_v53 }
 0xd22   :  { %v2683_v8 = vsel %vm32_vm0, %v2682_v56, 0.0  ;;  %v2714_v61 = vmul.f32 %v2713_v13, %v2709_v34  ;;  %v2708_v15 = vsub.f32 %v2658_v14, %v2707_v11 }
 0xd23   :  { %2684 = vadd.xlane.f32.xlu0 %v2683_v8 }
 0xd24   :  { %v2718_v16 = vmul.f32 %v2708_v15, %v2708_v15  ;;  %v2715_v18 = vsel %vm32_vm0, %v2714_v61, 0.0 }
 0xd26   :  { %v2723_v48 = vmul.f32 %v2722_v36, %v2718_v16 }
 0xd27   :  { %2716 = vadd.xlane.f32.xlu0 %v2715_v18 }
 0xd28   :  { %v2724_v55 = vsel %vm32_vm0, %v2723_v48, 0.0 }
 0xd29   :  { %2725 = vadd.xlane.f32.xlu1 %v2724_v55 }
 0xd3a   :  { %2665 = vrot.lane.b32.xlu1 %v2658_v14, %s3722_s20 }
 0xd3d   :  { %2663 = vrot.lane.b32.xlu0 %v2653_v59, %s3722_s20 }
 0xda8   :  { %v2681_v49 = vpop.xlane.xlu1 %2680 }
 0xdac   :  { %v2685_v19 = vpop.xlane.xlu0 %2684 }
 0xdad   :  { %v2686_v21 = vadd.f32 %v2685_v19, %v2681_v49 }
 0xdaf   :  { %v2687_v22 = vmul.f32 0.5, %v2686_v21 }
 0xdb0   :  { %v2717_v63 = vpop.xlane.xlu0 %2716 }
 0xdb1   :  { %v2688_v23 = vsub.f32 %v2687_v22, %v2335_v20 }
 0xdb2   :  { %v2726_v50 = vpop.xlane.xlu1 %2725 }
 0xdb3   :  { %v2689_v43 = vsel %vm2674_vm1, %v2688_v23, 0.0  ;;  %v2727_v24 = vadd.f32 %v2726_v50, %v2717_v63 }
 0xdb4   :  { %v2690_v7 = vrot.slane %v2689_v43, 4  ;;  %v2664_v25 = vpop.permute.xlu0 %2663 }
 0xdb5   :  { %v2728_v26 = vsub.f32 %v2727_v24, %v2336_v45  ;;  %v2669_v0 = vsel %vm32_vm0, %v2497_v58, %v2664_v25 }
 0xdb6   :  { %v2691_v27 = vadd.f32 %v2690_v7, %v2689_v43  ;;  %2672 = vst.msk [vmem:[%s4515_s7] sm:$0xff] %vm2671_vm5, %v2669_v0  ;;  %v2666_v28 = vpop.permute.xlu1 %2665 }
 0xdb7   :  { %v2729_v29 = vsel %vm2674_vm1, %v2728_v26, 0.0  ;;  %v2670_v30 = vsel %vm32_vm0, %v2502_v1, %v2666_v28  ;;  %vm2747_vm0 = vcmask 15360  }
 0xdb8   :  { %v2692_v31 = vrot.slane %v2691_v27, 2  ;;  %v2730_v32 = vrot.slane %v2729_v29, 4  ;;  %2673 = vst.msk [vmem:[%s4515_s7 + $0x8] sm:$0xff] %vm2671_vm5, %v2670_v30 }
 0xdba   :  { %v2731_v33 = vadd.f32 %v2730_v32, %v2729_v29  ;;  %v2693_v35 = vadd.f32 %v2692_v31, %v2691_v27 }
 0xdbc   :  { %v2732_v38 = vrot.slane %v2731_v33, 2  ;;  %v2694_v54 = vrot.slane %v2693_v35, 1 }
 0xdbe   :  { %v2695_v39 = vadd.f32 %v2694_v54, %v2693_v35  ;;  %v2733_v40 = vadd.f32 %v2732_v38, %v2731_v33 }
 0xdc0   :  { %v2696_v41 = vmul.f32 0.125, %v2695_v39  ;;  %v2734_v42 = vrot.slane %v2733_v40, 1 }
 0xdc2   :  { %2739 = vrot.lane.b32.xlu1 %v2696_v41, %s3724_s2  ;;  %v2735_v10 = vadd.f32 %v2734_v42, %v2733_v40 }
 0xdc4   :  { %v2736_v44 = vmul.f32 0.125, %v2735_v10 }
 0xdc6   :  { %2743 = vrot.lane.b32.xlu0 %v2736_v44, %s3725_s17  ;;  %v2737_v20 = vadd.f32 %v2736_v44, %v2696_v41 }
 0xe34   :  { %v2740_v17 = vpop.permute.xlu1 %2739 }
 0xe35   :  { %v2746_v37 = vsel %vm2674_vm1, %v2737_v20, %v2740_v17 }
 0xe38   :  { %v2744_v45 = vpop.permute.xlu0 %2743 }
 0xe39   :  { %v2748_v46 = vsel %vm2747_vm0, %v2746_v37, %v2744_v45 }
 0xe3a   :  { %2750 = vst.msk [vmem:[%s4516_s9] sm:$0x1] %vm2749_vm6, %v2748_v46 }

</bundles_post_ra>
